<compile_context>
chip_gen: v5e
topology: v5e:2x2
jax: 0.10.0
libtpu: 0.0.40
codegen_flags: <defaults>
</compile_context>

<pallas_src>
import functools

import jax
import jax.numpy as jnp
from jax import lax
from jax.experimental import pallas as pl
from jax.experimental.pallas import tpu as pltpu

LEAKY_SLOPE = 0.01   # PyTorch F.leaky_relu default negative_slope
BN_EPS = 1e-5
LANE = 128
MID_C = 64           # bottleneck mid width (fixed to 64 by the module)


def _leaky(y):
    return jnp.maximum(y, LEAKY_SLOPE * y)


# ---------------------------------------------------------------------------
# Per-generation VMEM budget + tiling helpers
# ---------------------------------------------------------------------------
def _vmem_limit_bytes():
    """Derive a per-generation VMEM limit (conservative fallback = 64 MiB)."""
    cap = 64 * 1024 * 1024
    try:
        info = pltpu.get_tpu_info()
        cap = int(getattr(info, "vmem_capacity_bytes", cap))
    except Exception:
        pass
    # keep >= 16 MiB headroom; never request more than 100 MiB
    return max(32 * 1024 * 1024, min(cap - 16 * 1024 * 1024, 100 * 1024 * 1024))


def _pick_row_tile(m, k, n_out, itemsize, budget):
    """Largest row tile that divides m, fits the VMEM budget and leaves >= 2
    grid steps (v7x has 2 TensorCores sharded over the parallel axis)."""
    for t in (2048, 1024, 512, 256, 128, 64, 32, 16, 8):
        if t >= m or m % t:
            continue
        # double-buffered input + output blocks, plus resident weights/scales
        need = (2 * t * (k + n_out) + k * n_out + 4 * n_out) * itemsize
        if need <= budget:
            return t
    return m  # full extent is always legal (single grid step)


# ---------------------------------------------------------------------------
# Kernel 1: pointwise (1x1) conv as a matmul + folded BN + leaky ReLU
# ---------------------------------------------------------------------------
def _pointwise_bn_act_kernel(x_ref, w_ref, scale_ref, shift_ref, o_ref, *,
                             use_vpu):
    x = x_ref[...]
    w = w_ref[...]
    if use_vpu:
        # tiny K: unrolled broadcast-FMA on the VPU instead of a <2%-utilized
        # MXU column.
        acc = jnp.zeros((x.shape[0], w.shape[1]), jnp.float32)
        for ci in range(x.shape[1]):
            acc = acc + x[:, ci:ci + 1] * w[ci:ci + 1, :]
    else:
        acc = jnp.dot(x, w, preferred_element_type=jnp.float32)
    y = acc * scale_ref[...] + shift_ref[...]
    o_ref[...] = _leaky(y).astype(o_ref.dtype)


def pointwise_bn_act(x2d, w, scale, shift, *, vmem_limit):
    m, k = x2d.shape
    n_out = w.shape[1]
    itemsize = x2d.dtype.itemsize
    tm = _pick_row_tile(m, k, n_out, itemsize, int(vmem_limit * 0.75))
    grid = (m // tm,)
    kern = functools.partial(_pointwise_bn_act_kernel, use_vpu=(k <= 16))

    return pl.pallas_call(
        kern,
        out_shape=jax.ShapeDtypeStruct((m, n_out), x2d.dtype),
        grid_spec=pltpu.PrefetchScalarGridSpec(
            num_scalar_prefetch=0,
            grid=grid,
            in_specs=[
                pl.BlockSpec((tm, k), lambda i: (i, 0)),
                pl.BlockSpec((k, n_out), lambda i: (0, 0)),
                pl.BlockSpec((1, n_out), lambda i: (0, 0)),
                pl.BlockSpec((1, n_out), lambda i: (0, 0)),
            ],
            out_specs=pl.BlockSpec((tm, n_out), lambda i: (i, 0)),
        ),
        compiler_params=pltpu.CompilerParams(
            dimension_semantics=("parallel",),
            vmem_limit_bytes=vmem_limit,
        ),
        cost_estimate=pl.CostEstimate(
            flops=2 * m * k * n_out,
            transcendentals=0,
            bytes_accessed=(m * k + k * n_out + m * n_out + 2 * n_out) * itemsize,
        ),
    )(x2d, w, scale, shift)


# ---------------------------------------------------------------------------
# Kernel 2: 3x3 conv (9 tap-matmuls, no HBM im2col) + BN + leaky, fused with
#           the final 1x1 conv + BN + leaky, the shortcut 1x1 + BN + leaky and
#           the residual add.  Grid = one step per image (padding keeps the
#           tap windows self-contained, so no halo across blocks).
# ---------------------------------------------------------------------------
def _fused_3x3_block_kernel(ph_ref, xs_ref, w2_ref, s2_ref, b2_ref,
                            w3_ref, s3_ref, b3_ref,
                            wsc_ref, ssc_ref, bsc_ref, o_ref, *,
                            stride, ho, wo, cin, use_vpu_shortcut):
    s = stride
    m = ho * wo
    c_mid = w2_ref.shape[-1]

    # Load the (small) per-image phase-decomposed padded activation once.
    phases = [ph_ref[0, p, :, :, :] for p in range(s * s)]  # each (hq, wq, c)

    # 3x3 conv as 9 accumulated matmuls over the taps.
    acc = jnp.zeros((m, c_mid), jnp.float32)
    for dy in range(3):
        for dx in range(3):
            ph = (dy % s) * s + (dx % s)
            oy, ox = dy // s, dx // s
            slab = phases[ph][oy:oy + ho, ox:ox + wo, :]      # (ho, wo, c)
            slab = slab.reshape(m, c_mid)
            acc = acc + jnp.dot(slab, w2_ref[dy * 3 + dx],
                                preferred_element_type=jnp.float32)
    h2 = _leaky(acc * s2_ref[...] + b2_ref[...])              # (m, 64), in VMEM

    # bk[2]: 1x1 conv + BN + leaky on the resident tile (no HBM round trip).
    y = jnp.dot(h2, w3_ref[...], preferred_element_type=jnp.float32)
    y = _leaky(y * s3_ref[...] + b3_ref[...])

    # shortcut: strided 1x1 conv (stride folded in the wrapper) + BN + leaky.
    xs = xs_ref[0]                                            # (m, cin)
    if use_vpu_shortcut:
        wsc = wsc_ref[...]
        r = jnp.zeros((m, wsc.shape[-1]), jnp.float32)
        for ci in range(cin):
            r = r + xs[:, ci:ci + 1] * wsc[ci:ci + 1, :]
    else:
        r = jnp.dot(xs, wsc_ref[...], preferred_element_type=jnp.float32)
    r = _leaky(r * ssc_ref[...] + bsc_ref[...])

    o_ref[0] = (y + r).astype(o_ref.dtype)


def fused_3x3_1x1_shortcut(phases, xs, w2_taps, s2, b2, w3p, s3p, b3p,
                           wscp, sscp, bscp, *, stride, ho, wo, vmem_limit):
    n, pp, hq, wq, c_mid = phases.shape
    m = ho * wo
    cin = xs.shape[-1]
    coutp = w3p.shape[-1]
    kern = functools.partial(_fused_3x3_block_kernel, stride=stride, ho=ho,
                             wo=wo, cin=cin, use_vpu_shortcut=(cin <= 16))

    flops = n * (2 * m * 9 * c_mid * c_mid + 2 * m * c_mid * coutp
                 + 2 * m * cin * coutp)
    bytes_acc = 4 * (phases.size + xs.size + w2_taps.size + w3p.size
                     + wscp.size + n * m * coutp)

    return pl.pallas_call(
        kern,
        out_shape=jax.ShapeDtypeStruct((n, m, coutp), jnp.float32),
        grid_spec=pltpu.PrefetchScalarGridSpec(
            num_scalar_prefetch=0,
            grid=(n,),
            in_specs=[
                pl.BlockSpec((1, pp, hq, wq, c_mid),
                             lambda i: (i, 0, 0, 0, 0)),
                pl.BlockSpec((1, m, cin), lambda i: (i, 0, 0)),
                pl.BlockSpec((9, c_mid, c_mid), lambda i: (0, 0, 0)),
                pl.BlockSpec((1, c_mid), lambda i: (0, 0)),
                pl.BlockSpec((1, c_mid), lambda i: (0, 0)),
                pl.BlockSpec((c_mid, coutp), lambda i: (0, 0)),
                pl.BlockSpec((1, coutp), lambda i: (0, 0)),
                pl.BlockSpec((1, coutp), lambda i: (0, 0)),
                pl.BlockSpec((cin, coutp), lambda i: (0, 0)),
                pl.BlockSpec((1, coutp), lambda i: (0, 0)),
                pl.BlockSpec((1, coutp), lambda i: (0, 0)),
            ],
            out_specs=pl.BlockSpec((1, m, coutp), lambda i: (i, 0, 0)),
        ),
        compiler_params=pltpu.CompilerParams(
            dimension_semantics=("parallel",),
            vmem_limit_bytes=vmem_limit,
        ),
        cost_estimate=pl.CostEstimate(flops=flops, transcendentals=0,
                                      bytes_accessed=bytes_acc),
    )(phases, xs, w2_taps, s2, b2, w3p, s3p, b3p, wscp, sscp, bscp)


# ---------------------------------------------------------------------------
# Wrapper-side layout helpers (pure XLA layout ops, ~1x the data they touch)
# ---------------------------------------------------------------------------
def _fold_bn(gamma, beta, mean, var, eps=BN_EPS):
    scale = gamma / jnp.sqrt(var + eps)
    shift = beta - mean * scale
    return scale.reshape(1, -1), shift.reshape(1, -1)


def _conv1x1_w(w):  # (Cout, Cin, 1, 1) -> (Cin, Cout)
    return jnp.transpose(w[:, :, 0, 0], (1, 0))


def _pad_last(a, n_target):
    pad = n_target - a.shape[-1]
    if pad == 0:
        return a
    return jnp.pad(a, [(0, 0)] * (a.ndim - 1) + [(0, pad)])


def _phase_decompose(h1, s, ho, wo):
    """pad=1 then space-to-depth with factor `s` so every 3x3 tap becomes a
    contiguous (shift 0/1) window inside one phase.  Cost ~1.3x of h1, which
    replaces the old 9x im2col HBM tensor."""
    n, h, w, c = h1.shape
    hq = max(ho + 2 // s, -(-(h + 2) // s))
    wq = max(wo + 2 // s, -(-(w + 2) // s))
    hp, wp = s * hq, s * wq
    h1p = jnp.pad(h1, ((0, 0), (1, hp - h - 1), (1, wp - w - 1), (0, 0)))
    ph = h1p.reshape(n, hq, s, wq, s, c)
    ph = jnp.transpose(ph, (0, 2, 4, 1, 3, 5))      # (n, s, s, hq, wq, c)
    return ph.reshape(n, s * s, hq, wq, c)


# ---------------------------------------------------------------------------
# Full bottleneck block forward (Pallas path)
# ---------------------------------------------------------------------------
def bottleneck_block_forward(x_nchw, params, stride):
    n, cin, h, w = x_nchw.shape
    s = int(stride)
    vmem_limit = _vmem_limit_bytes()

    x = jnp.transpose(x_nchw, (0, 2, 3, 1))  # NHWC, channels on lanes

    # bk[0]: 1x1 conv (cin -> 64) + BN + leaky
    w1 = _conv1x1_w(params["bk0_w"])
    s1, b1 = _fold_bn(params["bk0_gamma"], params["bk0_beta"],
                      params["bk0_mean"], params["bk0_var"])
    h1 = pointwise_bn_act(x.reshape(n * h * w, cin), w1, s1, b1,
                          vmem_limit=vmem_limit)
    h1 = h1.reshape(n, h, w, MID_C)

    # output spatial size of the 3x3 (pad=1, stride s) / shortcut (stride s)
    ho = (h + 2 - 3) // s + 1
    wo = (w + 2 - 3) // s + 1

    # pad + stride-phase rearrange of h1 (replaces the HBM im2col)
    phases = _phase_decompose(h1, s, ho, wo)

    # shortcut input: stride-s subsampling of x
    xs = x[:, ::s, ::s, :][:, :ho, :wo, :].reshape(n, ho * wo, cin)

    # weights / folded BN, Cout padded up to a lane-dense multiple of 128
    cout = params["bk2_w"].shape[0]
    coutp = ((cout + LANE - 1) // LANE) * LANE

    w2_taps = jnp.transpose(params["bk1_w"], (2, 3, 1, 0)).reshape(9, MID_C, MID_C)
    s2, b2 = _fold_bn(params["bk1_gamma"], params["bk1_beta"],
                      params["bk1_mean"], params["bk1_var"])

    w3 = _pad_last(_conv1x1_w(params["bk2_w"]), coutp)
    s3, b3 = _fold_bn(params["bk2_gamma"], params["bk2_beta"],
                      params["bk2_mean"], params["bk2_var"])
    s3, b3 = _pad_last(s3, coutp), _pad_last(b3, coutp)

    wsc = _pad_last(_conv1x1_w(params["sc_w"]), coutp)
    ssc, bsc = _fold_bn(params["sc_gamma"], params["sc_beta"],
                        params["sc_mean"], params["sc_var"])
    ssc, bsc = _pad_last(ssc, coutp), _pad_last(bsc, coutp)

    out = fused_3x3_1x1_shortcut(phases, xs, w2_taps, s2, b2, w3, s3, b3,
                                 wsc, ssc, bsc, stride=s, ho=ho, wo=wo,
                                 vmem_limit=vmem_limit)

    out = out[:, :, :cout].reshape(n, ho, wo, cout)
    return jnp.transpose(out, (0, 3, 1, 2))  # back to NCHW


# ---------------------------------------------------------------------------
# Pure-JAX reference (mirrors the PyTorch module, inference-mode BN)
# ---------------------------------------------------------------------------
def _basic_conv_ref(x, w, gamma, beta, mean, var, stride, padding):
    y = lax.conv_general_dilated(
        x, w, window_strides=(stride, stride),
        padding=((padding, padding), (padding, padding)),
        dimension_numbers=("NCHW", "OIHW", "NCHW"))
    scale = gamma / jnp.sqrt(var + BN_EPS)
    shift = beta - mean * scale
    y = y * scale[None, :, None, None] + shift[None, :, None, None]
    return jnp.where(y > 0, y, LEAKY_SLOPE * y)


def bottleneck_block_ref(x, params, stride):
    res = _basic_conv_ref(x, params["sc_w"], params["sc_gamma"],
                          params["sc_beta"], params["sc_mean"],
                          params["sc_var"], stride, 0)
    y = _basic_conv_ref(x, params["bk0_w"], params["bk0_gamma"],
                        params["bk0_beta"], params["bk0_mean"],
                        params["bk0_var"], 1, 0)
    y = _basic_conv_ref(y, params["bk1_w"], params["bk1_gamma"],
                        params["bk1_beta"], params["bk1_mean"],
                        params["bk1_var"], stride, 1)
    y = _basic_conv_ref(y, params["bk2_w"], params["bk2_gamma"],
                        params["bk2_beta"], params["bk2_mean"],
                        params["bk2_var"], 1, 0)
    return y + res


# ---------------------------------------------------------------------------
def _init_params(key, c_in, c_out):
    ks = jax.random.split(key, 8)

    def bn(k, c):
        k1, k2, k3, k4 = jax.random.split(k, 4)
        return {
            "gamma": 1.0 + 0.1 * jax.random.normal(k1, (c,), jnp.float32),
            "beta": 0.1 * jax.random.normal(k2, (c,), jnp.float32),
            "mean": 0.1 * jax.random.normal(k3, (c,), jnp.float32),
            "var": jax.random.uniform(k4, (c,), jnp.float32, 0.5, 1.5),
        }

    params = {
        "sc_w": 0.2 * jax.random.normal(ks[0], (c_out, c_in, 1, 1), jnp.float32),
        "bk0_w": 0.2 * jax.random.normal(ks[1], (64, c_in, 1, 1), jnp.float32),
        "bk1_w": 0.2 * jax.random.normal(ks[2], (64, 64, 3, 3), jnp.float32),
        "bk2_w": 0.2 * jax.random.normal(ks[3], (c_out, 64, 1, 1), jnp.float32),
    }
    for name, k, c in (("sc", ks[4], c_out), ("bk0", ks[5], 64),
                       ("bk1", ks[6], 64), ("bk2", ks[7], c_out)):
        for p, v in bn(k, c).items():
            params[f"{name}_{p}"] = v
    return params


if __name__ == "__main__":
    key = jax.random.PRNGKey(0)
    N, C_IN, C_OUT, H, W, STRIDE = 2, 4, 8, 16, 16, 2

    kx, kp = jax.random.split(key)
    x = jax.random.normal(kx, (N, C_IN, H, W), dtype=jnp.float32)
    params = _init_params(kp, C_IN, C_OUT)

    fwd = jax.jit(functools.partial(bottleneck_block_forward, stride=STRIDE))
    out = fwd(x, params)
    jax.block_until_ready(out)

    ref = bottleneck_block_ref(x, params, STRIDE)
    jax.block_until_ready(ref)

    assert out.shape == ref.shape, (out.shape, ref.shape)
    assert out.dtype == jnp.float32
    max_err = float(jnp.max(jnp.abs(out - ref)))
    assert bool(jnp.allclose(out, ref, rtol=1e-3, atol=1e-3)), max_err

    print("KERNEL_OK")
</pallas_src>

<mosaic_0001>
module attributes {stable_mosaic.version = 11 : i64} {
  func.func @_pointwise_bn_act_kernel(%arg0: i32, %arg1: memref<256x4xf32, #tpu.memory_space<vmem>>, %arg2: memref<4x64xf32, #tpu.memory_space<vmem>>, %arg3: memref<1x64xf32, #tpu.memory_space<vmem>>, %arg4: memref<1x64xf32, #tpu.memory_space<vmem>>, %arg5: memref<256x64xf32, #tpu.memory_space<vmem>>) attributes {dimension_semantics = [#tpu.dimension_semantics<parallel>], iteration_bounds = array<i64: 2>, scalar_prefetch = 0 : i64, scratch_operands = 0 : i64, tpu.core_type = #tpu.core_type<tc>, window_params = [{transform_indices = @transform_0, window_bounds = array<i64: 256, 4>}, {pipeline_mode = #tpu.pipeline_mode<synchronous>, transform_indices = @transform_1, window_bounds = array<i64: 4, 64>}, {pipeline_mode = #tpu.pipeline_mode<synchronous>, transform_indices = @transform_2, window_bounds = array<i64: 1, 64>}, {pipeline_mode = #tpu.pipeline_mode<synchronous>, transform_indices = @transform_3, window_bounds = array<i64: 1, 64>}, {transform_indices = @transform_4, window_bounds = array<i64: 256, 64>}]} {
    %c0 = arith.constant 0 : index
    %c0_0 = arith.constant 0 : index
    %0 = vector.load %arg1[%c0, %c0_0] : memref<256x4xf32, #tpu.memory_space<vmem>>, vector<256x4xf32>
    %c0_1 = arith.constant 0 : index
    %c0_2 = arith.constant 0 : index
    %1 = vector.load %arg2[%c0_1, %c0_2] : memref<4x64xf32, #tpu.memory_space<vmem>>, vector<4x64xf32>
    %cst = arith.constant 0.000000e+00 : f32
    %2 = vector.broadcast %cst : f32 to vector<256x64xf32>
    %3 = vector.extract_strided_slice %0 {offsets = [0, 0], sizes = [256, 1], strides = [1, 1]} : vector<256x4xf32> to vector<256x1xf32>
    %4 = vector.extract_strided_slice %1 {offsets = [0, 0], sizes = [1, 64], strides = [1, 1]} : vector<4x64xf32> to vector<1x64xf32>
    %5 = vector.broadcast %3 : vector<256x1xf32> to vector<256x64xf32>
    %6 = vector.broadcast %4 : vector<1x64xf32> to vector<256x64xf32>
    %7 = arith.mulf %5, %6 : vector<256x64xf32>
    %8 = arith.addf %2, %7 : vector<256x64xf32>
    %9 = vector.extract_strided_slice %0 {offsets = [0, 1], sizes = [256, 1], strides = [1, 1]} : vector<256x4xf32> to vector<256x1xf32>
    %10 = vector.extract_strided_slice %1 {offsets = [1, 0], sizes = [1, 64], strides = [1, 1]} : vector<4x64xf32> to vector<1x64xf32>
    %11 = vector.broadcast %9 : vector<256x1xf32> to vector<256x64xf32>
    %12 = vector.broadcast %10 : vector<1x64xf32> to vector<256x64xf32>
    %13 = arith.mulf %11, %12 : vector<256x64xf32>
    %14 = arith.addf %8, %13 : vector<256x64xf32>
    %15 = vector.extract_strided_slice %0 {offsets = [0, 2], sizes = [256, 1], strides = [1, 1]} : vector<256x4xf32> to vector<256x1xf32>
    %16 = vector.extract_strided_slice %1 {offsets = [2, 0], sizes = [1, 64], strides = [1, 1]} : vector<4x64xf32> to vector<1x64xf32>
    %17 = vector.broadcast %15 : vector<256x1xf32> to vector<256x64xf32>
    %18 = vector.broadcast %16 : vector<1x64xf32> to vector<256x64xf32>
    %19 = arith.mulf %17, %18 : vector<256x64xf32>
    %20 = arith.addf %14, %19 : vector<256x64xf32>
    %21 = vector.extract_strided_slice %0 {offsets = [0, 3], sizes = [256, 1], strides = [1, 1]} : vector<256x4xf32> to vector<256x1xf32>
    %22 = vector.extract_strided_slice %1 {offsets = [3, 0], sizes = [1, 64], strides = [1, 1]} : vector<4x64xf32> to vector<1x64xf32>
    %23 = vector.broadcast %21 : vector<256x1xf32> to vector<256x64xf32>
    %24 = vector.broadcast %22 : vector<1x64xf32> to vector<256x64xf32>
    %25 = arith.mulf %23, %24 : vector<256x64xf32>
    %26 = arith.addf %20, %25 : vector<256x64xf32>
    %c0_3 = arith.constant 0 : index
    %c0_4 = arith.constant 0 : index
    %27 = vector.load %arg3[%c0_3, %c0_4] : memref<1x64xf32, #tpu.memory_space<vmem>>, vector<1x64xf32>
    %28 = vector.broadcast %27 : vector<1x64xf32> to vector<256x64xf32>
    %29 = arith.mulf %26, %28 : vector<256x64xf32>
    %c0_5 = arith.constant 0 : index
    %c0_6 = arith.constant 0 : index
    %30 = vector.load %arg4[%c0_5, %c0_6] : memref<1x64xf32, #tpu.memory_space<vmem>>, vector<1x64xf32>
    %31 = vector.broadcast %30 : vector<1x64xf32> to vector<256x64xf32>
    %32 = arith.addf %29, %31 : vector<256x64xf32>
    %cst_7 = arith.constant 0.00999999977 : f32
    %33 = vector.broadcast %cst_7 : f32 to vector<256x64xf32>
    %34 = arith.mulf %33, %32 : vector<256x64xf32>
    %35 = arith.maximumf %32, %34 : vector<256x64xf32>
    %c0_8 = arith.constant 0 : index
    %c0_9 = arith.constant 0 : index
    %36 = vector.load %arg5[%c0_8, %c0_9] : memref<256x64xf32, #tpu.memory_space<vmem>>, vector<256x64xf32>
    tpu.vector_store %arg5[%c0_8, %c0_9], %35 {strides = array<i32>} : memref<256x64xf32, #tpu.memory_space<vmem>>, vector<256x64xf32>,
    return
  }
  func.func @transform_0(%arg0: i32) -> (i32, i32) {
    %c0_i32 = arith.constant 0 : i32
    %c0_i32_0 = arith.constant 0 : i32
    return %arg0, %c0_i32 : i32, i32
  }
  func.func @transform_1(%arg0: i32) -> (i32, i32) {
    %c0_i32 = arith.constant 0 : i32
    %c0_i32_0 = arith.constant 0 : i32
    %c0_i32_1 = arith.constant 0 : i32
    return %c0_i32, %c0_i32_0 : i32, i32
  }
  func.func @transform_2(%arg0: i32) -> (i32, i32) {
    %c0_i32 = arith.constant 0 : i32
    %c0_i32_0 = arith.constant 0 : i32
    %c0_i32_1 = arith.constant 0 : i32
    return %c0_i32, %c0_i32_0 : i32, i32
  }
  func.func @transform_3(%arg0: i32) -> (i32, i32) {
    %c0_i32 = arith.constant 0 : i32
    %c0_i32_0 = arith.constant 0 : i32
    %c0_i32_1 = arith.constant 0 : i32
    return %c0_i32, %c0_i32_0 : i32, i32
  }
  func.func @transform_4(%arg0: i32) -> (i32, i32) {
    %c0_i32 = arith.constant 0 : i32
    %c0_i32_0 = arith.constant 0 : i32
    return %arg0, %c0_i32 : i32, i32
  }
}

module attributes {stable_mosaic.version = 11 : i64} {
  func.func @_fused_3x3_block_kernel(%arg0: i32, %arg1: memref<1x4x9x9x64xf32, #tpu.memory_space<vmem>>, %arg2: memref<1x64x4xf32, #tpu.memory_space<vmem>>, %arg3: memref<9x64x64xf32, #tpu.memory_space<vmem>>, %arg4: memref<1x64xf32, #tpu.memory_space<vmem>>, %arg5: memref<1x64xf32, #tpu.memory_space<vmem>>, %arg6: memref<64x128xf32, #tpu.memory_space<vmem>>, %arg7: memref<1x128xf32, #tpu.memory_space<vmem>>, %arg8: memref<1x128xf32, #tpu.memory_space<vmem>>, %arg9: memref<4x128xf32, #tpu.memory_space<vmem>>, %arg10: memref<1x128xf32, #tpu.memory_space<vmem>>, %arg11: memref<1x128xf32, #tpu.memory_space<vmem>>, %arg12: memref<1x64x128xf32, #tpu.memory_space<vmem>>) attributes {dimension_semantics = [#tpu.dimension_semantics<parallel>], iteration_bounds = array<i64: 2>, scalar_prefetch = 0 : i64, scratch_operands = 0 : i64, tpu.core_type = #tpu.core_type<tc>, window_params = [{transform_indices = @transform_0, window_bounds = array<i64: 1, 4, 9, 9, 64>}, {transform_indices = @transform_1, window_bounds = array<i64: 1, 64, 4>}, {pipeline_mode = #tpu.pipeline_mode<synchronous>, transform_indices = @transform_2, window_bounds = array<i64: 9, 64, 64>}, {pipeline_mode = #tpu.pipeline_mode<synchronous>, transform_indices = @transform_3, window_bounds = array<i64: 1, 64>}, {pipeline_mode = #tpu.pipeline_mode<synchronous>, transform_indices = @transform_4, window_bounds = array<i64: 1, 64>}, {pipeline_mode = #tpu.pipeline_mode<synchronous>, transform_indices = @transform_5, window_bounds = array<i64: 64, 128>}, {pipeline_mode = #tpu.pipeline_mode<synchronous>, transform_indices = @transform_6, window_bounds = array<i64: 1, 128>}, {pipeline_mode = #tpu.pipeline_mode<synchronous>, transform_indices = @transform_7, window_bounds = array<i64: 1, 128>}, {pipeline_mode = #tpu.pipeline_mode<synchronous>, transform_indices = @transform_8, window_bounds = array<i64: 4, 128>}, {pipeline_mode = #tpu.pipeline_mode<synchronous>, transform_indices = @transform_9, window_bounds = array<i64: 1, 128>}, {pipeline_mode = #tpu.pipeline_mode<synchronous>, transform_indices = @transform_10, window_bounds = array<i64: 1, 128>}, {transform_indices = @transform_11, window_bounds = array<i64: 1, 64, 128>}]} {
    %c0 = arith.constant 0 : index
    %c0_0 = arith.constant 0 : index
    %c0_1 = arith.constant 0 : index
    %c0_2 = arith.constant 0 : index
    %c0_3 = arith.constant 0 : index
    %0 = vector.load %arg1[%c0, %c0_0, %c0_1, %c0_2, %c0_3] : memref<1x4x9x9x64xf32, #tpu.memory_space<vmem>>, vector<1x1x9x9x64xf32>
    %1 = vector.shape_cast %0 : vector<1x1x9x9x64xf32> to vector<9x9x64xf32>
    %c0_4 = arith.constant 0 : index
    %c1 = arith.constant 1 : index
    %c0_5 = arith.constant 0 : index
    %c0_6 = arith.constant 0 : index
    %c0_7 = arith.constant 0 : index
    %2 = vector.load %arg1[%c0_4, %c1, %c0_5, %c0_6, %c0_7] : memref<1x4x9x9x64xf32, #tpu.memory_space<vmem>>, vector<1x1x9x9x64xf32>
    %3 = vector.shape_cast %2 : vector<1x1x9x9x64xf32> to vector<9x9x64xf32>
    %c0_8 = arith.constant 0 : index
    %c2 = arith.constant 2 : index
    %c0_9 = arith.constant 0 : index
    %c0_10 = arith.constant 0 : index
    %c0_11 = arith.constant 0 : index
    %4 = vector.load %arg1[%c0_8, %c2, %c0_9, %c0_10, %c0_11] : memref<1x4x9x9x64xf32, #tpu.memory_space<vmem>>, vector<1x1x9x9x64xf32>
    %5 = vector.shape_cast %4 : vector<1x1x9x9x64xf32> to vector<9x9x64xf32>
    %c0_12 = arith.constant 0 : index
    %c3 = arith.constant 3 : index
    %c0_13 = arith.constant 0 : index
    %c0_14 = arith.constant 0 : index
    %c0_15 = arith.constant 0 : index
    %6 = vector.load %arg1[%c0_12, %c3, %c0_13, %c0_14, %c0_15] : memref<1x4x9x9x64xf32, #tpu.memory_space<vmem>>, vector<1x1x9x9x64xf32>
    %7 = vector.shape_cast %6 : vector<1x1x9x9x64xf32> to vector<9x9x64xf32>
    %cst = arith.constant 0.000000e+00 : f32
    %8 = vector.broadcast %cst : f32 to vector<64x64xf32>
    %9 = vector.extract_strided_slice %1 {offsets = [0, 0, 0], sizes = [8, 8, 64], strides = [1, 1, 1]} : vector<9x9x64xf32> to vector<8x8x64xf32>
    %10 = vector.shape_cast %9 : vector<8x8x64xf32> to vector<64x64xf32>
    %c0_16 = arith.constant 0 : index
    %c0_17 = arith.constant 0 : index
    %c0_18 = arith.constant 0 : index
    %11 = vector.load %arg3[%c0_16, %c0_17, %c0_18] : memref<9x64x64xf32, #tpu.memory_space<vmem>>, vector<1x64x64xf32>
    %12 = vector.shape_cast %11 : vector<1x64x64xf32> to vector<64x64xf32>
    %cst_19 = arith.constant dense<0.000000e+00> : vector<64x64xf32>
    %13 = tpu.matmul %10, %12, %cst_19 {dimension_numbers = #tpu.dot_dimension_numbers<[1], [0], [0], [1], [0, 0, 1, 1], [], []>} : vector<64x64xf32>, vector<64x64xf32>, vector<64x64xf32> -> vector<64x64xf32>
    %14 = arith.addf %8, %13 : vector<64x64xf32>
    %15 = vector.extract_strided_slice %3 {offsets = [0, 0, 0], sizes = [8, 8, 64], strides = [1, 1, 1]} : vector<9x9x64xf32> to vector<8x8x64xf32>
    %16 = vector.shape_cast %15 : vector<8x8x64xf32> to vector<64x64xf32>
    %c1_20 = arith.constant 1 : index
    %c0_21 = arith.constant 0 : index
    %c0_22 = arith.constant 0 : index
    %17 = vector.load %arg3[%c1_20, %c0_21, %c0_22] : memref<9x64x64xf32, #tpu.memory_space<vmem>>, vector<1x64x64xf32>
    %18 = vector.shape_cast %17 : vector<1x64x64xf32> to vector<64x64xf32>
    %cst_23 = arith.constant dense<0.000000e+00> : vector<64x64xf32>
    %19 = tpu.matmul %16, %18, %cst_23 {dimension_numbers = #tpu.dot_dimension_numbers<[1], [0], [0], [1], [0, 0, 1, 1], [], []>} : vector<64x64xf32>, vector<64x64xf32>, vector<64x64xf32> -> vector<64x64xf32>
    %20 = arith.addf %14, %19 : vector<64x64xf32>
    %21 = vector.extract_strided_slice %1 {offsets = [0, 1, 0], sizes = [8, 8, 64], strides = [1, 1, 1]} : vector<9x9x64xf32> to vector<8x8x64xf32>
    %22 = vector.shape_cast %21 : vector<8x8x64xf32> to vector<64x64xf32>
    %c2_24 = arith.constant 2 : index
    %c0_25 = arith.constant 0 : index
    %c0_26 = arith.constant 0 : index
    %23 = vector.load %arg3[%c2_24, %c0_25, %c0_26] : memref<9x64x64xf32, #tpu.memory_space<vmem>>, vector<1x64x64xf32>
    %24 = vector.shape_cast %23 : vector<1x64x64xf32> to vector<64x64xf32>
    %cst_27 = arith.constant dense<0.000000e+00> : vector<64x64xf32>
    %25 = tpu.matmul %22, %24, %cst_27 {dimension_numbers = #tpu.dot_dimension_numbers<[1], [0], [0], [1], [0, 0, 1, 1], [], []>} : vector<64x64xf32>, vector<64x64xf32>, vector<64x64xf32> -> vector<64x64xf32>
    %26 = arith.addf %20, %25 : vector<64x64xf32>
    %27 = vector.extract_strided_slice %5 {offsets = [0, 0, 0], sizes = [8, 8, 64], strides = [1, 1, 1]} : vector<9x9x64xf32> to vector<8x8x64xf32>
    %28 = vector.shape_cast %27 : vector<8x8x64xf32> to vector<64x64xf32>
    %c3_28 = arith.constant 3 : index
    %c0_29 = arith.constant 0 : index
    %c0_30 = arith.constant 0 : index
    %29 = vector.load %arg3[%c3_28, %c0_29, %c0_30] : memref<9x64x64xf32, #tpu.memory_space<vmem>>, vector<1x64x64xf32>
    %30 = vector.shape_cast %29 : vector<1x64x64xf32> to vector<64x64xf32>
    %cst_31 = arith.constant dense<0.000000e+00> : vector<64x64xf32>
    %31 = tpu.matmul %28, %30, %cst_31 {dimension_numbers = #tpu.dot_dimension_numbers<[1], [0], [0], [1], [0, 0, 1, 1], [], []>} : vector<64x64xf32>, vector<64x64xf32>, vector<64x64xf32> -> vector<64x64xf32>
    %32 = arith.addf %26, %31 : vector<64x64xf32>
    %33 = vector.extract_strided_slice %7 {offsets = [0, 0, 0], sizes = [8, 8, 64], strides = [1, 1, 1]} : vector<9x9x64xf32> to vector<8x8x64xf32>
    %34 = vector.shape_cast %33 : vector<8x8x64xf32> to vector<64x64xf32>
    %c4 = arith.constant 4 : index
    %c0_32 = arith.constant 0 : index
    %c0_33 = arith.constant 0 : index
    %35 = vector.load %arg3[%c4, %c0_32, %c0_33] : memref<9x64x64xf32, #tpu.memory_space<vmem>>, vector<1x64x64xf32>
    %36 = vector.shape_cast %35 : vector<1x64x64xf32> to vector<64x64xf32>
    %cst_34 = arith.constant dense<0.000000e+00> : vector<64x64xf32>
    %37 = tpu.matmul %34, %36, %cst_34 {dimension_numbers = #tpu.dot_dimension_numbers<[1], [0], [0], [1], [0, 0, 1, 1], [], []>} : vector<64x64xf32>, vector<64x64xf32>, vector<64x64xf32> -> vector<64x64xf32>
    %38 = arith.addf %32, %37 : vector<64x64xf32>
    %39 = vector.extract_strided_slice %5 {offsets = [0, 1, 0], sizes = [8, 8, 64], strides = [1, 1, 1]} : vector<9x9x64xf32> to vector<8x8x64xf32>
    %40 = vector.shape_cast %39 : vector<8x8x64xf32> to vector<64x64xf32>
    %c5 = arith.constant 5 : index
    %c0_35 = arith.constant 0 : index
    %c0_36 = arith.constant 0 : index
    %41 = vector.load %arg3[%c5, %c0_35, %c0_36] : memref<9x64x64xf32, #tpu.memory_space<vmem>>, vector<1x64x64xf32>
    %42 = vector.shape_cast %41 : vector<1x64x64xf32> to vector<64x64xf32>
    %cst_37 = arith.constant dense<0.000000e+00> : vector<64x64xf32>
    %43 = tpu.matmul %40, %42, %cst_37 {dimension_numbers = #tpu.dot_dimension_numbers<[1], [0], [0], [1], [0, 0, 1, 1], [], []>} : vector<64x64xf32>, vector<64x64xf32>, vector<64x64xf32> -> vector<64x64xf32>
    %44 = arith.addf %38, %43 : vector<64x64xf32>
    %45 = vector.extract_strided_slice %1 {offsets = [1, 0, 0], sizes = [8, 8, 64], strides = [1, 1, 1]} : vector<9x9x64xf32> to vector<8x8x64xf32>
    %46 = vector.shape_cast %45 : vector<8x8x64xf32> to vector<64x64xf32>
    %c6 = arith.constant 6 : index
    %c0_38 = arith.constant 0 : index
    %c0_39 = arith.constant 0 : index
    %47 = vector.load %arg3[%c6, %c0_38, %c0_39] : memref<9x64x64xf32, #tpu.memory_space<vmem>>, vector<1x64x64xf32>
    %48 = vector.shape_cast %47 : vector<1x64x64xf32> to vector<64x64xf32>
    %cst_40 = arith.constant dense<0.000000e+00> : vector<64x64xf32>
    %49 = tpu.matmul %46, %48, %cst_40 {dimension_numbers = #tpu.dot_dimension_numbers<[1], [0], [0], [1], [0, 0, 1, 1], [], []>} : vector<64x64xf32>, vector<64x64xf32>, vector<64x64xf32> -> vector<64x64xf32>
    %50 = arith.addf %44, %49 : vector<64x64xf32>
    %51 = vector.extract_strided_slice %3 {offsets = [1, 0, 0], sizes = [8, 8, 64], strides = [1, 1, 1]} : vector<9x9x64xf32> to vector<8x8x64xf32>
    %52 = vector.shape_cast %51 : vector<8x8x64xf32> to vector<64x64xf32>
    %c7 = arith.constant 7 : index
    %c0_41 = arith.constant 0 : index
    %c0_42 = arith.constant 0 : index
    %53 = vector.load %arg3[%c7, %c0_41, %c0_42] : memref<9x64x64xf32, #tpu.memory_space<vmem>>, vector<1x64x64xf32>
    %54 = vector.shape_cast %53 : vector<1x64x64xf32> to vector<64x64xf32>
    %cst_43 = arith.constant dense<0.000000e+00> : vector<64x64xf32>
    %55 = tpu.matmul %52, %54, %cst_43 {dimension_numbers = #tpu.dot_dimension_numbers<[1], [0], [0], [1], [0, 0, 1, 1], [], []>} : vector<64x64xf32>, vector<64x64xf32>, vector<64x64xf32> -> vector<64x64xf32>
    %56 = arith.addf %50, %55 : vector<64x64xf32>
    %57 = vector.extract_strided_slice %1 {offsets = [1, 1, 0], sizes = [8, 8, 64], strides = [1, 1, 1]} : vector<9x9x64xf32> to vector<8x8x64xf32>
    %58 = vector.shape_cast %57 : vector<8x8x64xf32> to vector<64x64xf32>
    %c8 = arith.constant 8 : index
    %c0_44 = arith.constant 0 : index
    %c0_45 = arith.constant 0 : index
    %59 = vector.load %arg3[%c8, %c0_44, %c0_45] : memref<9x64x64xf32, #tpu.memory_space<vmem>>, vector<1x64x64xf32>
    %60 = vector.shape_cast %59 : vector<1x64x64xf32> to vector<64x64xf32>
    %cst_46 = arith.constant dense<0.000000e+00> : vector<64x64xf32>
    %61 = tpu.matmul %58, %60, %cst_46 {dimension_numbers = #tpu.dot_dimension_numbers<[1], [0], [0], [1], [0, 0, 1, 1], [], []>} : vector<64x64xf32>, vector<64x64xf32>, vector<64x64xf32> -> vector<64x64xf32>
    %62 = arith.addf %56, %61 : vector<64x64xf32>
    %c0_47 = arith.constant 0 : index
    %c0_48 = arith.constant 0 : index
    %63 = vector.load %arg4[%c0_47, %c0_48] : memref<1x64xf32, #tpu.memory_space<vmem>>, vector<1x64xf32>
    %64 = vector.broadcast %63 : vector<1x64xf32> to vector<64x64xf32>
    %65 = arith.mulf %62, %64 : vector<64x64xf32>
    %c0_49 = arith.constant 0 : index
    %c0_50 = arith.constant 0 : index
    %66 = vector.load %arg5[%c0_49, %c0_50] : memref<1x64xf32, #tpu.memory_space<vmem>>, vector<1x64xf32>
    %67 = vector.broadcast %66 : vector<1x64xf32> to vector<64x64xf32>
    %68 = arith.addf %65, %67 : vector<64x64xf32>
    %cst_51 = arith.constant 0.00999999977 : f32
    %69 = vector.broadcast %cst_51 : f32 to vector<64x64xf32>
    %70 = arith.mulf %69, %68 : vector<64x64xf32>
    %71 = arith.maximumf %68, %70 : vector<64x64xf32>
    %c0_52 = arith.constant 0 : index
    %c0_53 = arith.constant 0 : index
    %72 = vector.load %arg6[%c0_52, %c0_53] : memref<64x128xf32, #tpu.memory_space<vmem>>, vector<64x128xf32>
    %cst_54 = arith.constant dense<0.000000e+00> : vector<64x128xf32>
    %73 = tpu.matmul %71, %72, %cst_54 {dimension_numbers = #tpu.dot_dimension_numbers<[1], [0], [0], [1], [0, 0, 1, 1], [], []>} : vector<64x64xf32>, vector<64x128xf32>, vector<64x128xf32> -> vector<64x128xf32>
    %c0_55 = arith.constant 0 : index
    %c0_56 = arith.constant 0 : index
    %74 = vector.load %arg7[%c0_55, %c0_56] : memref<1x128xf32, #tpu.memory_space<vmem>>, vector<1x128xf32>
    %75 = vector.broadcast %74 : vector<1x128xf32> to vector<64x128xf32>
    %76 = arith.mulf %73, %75 : vector<64x128xf32>
    %c0_57 = arith.constant 0 : index
    %c0_58 = arith.constant 0 : index
    %77 = vector.load %arg8[%c0_57, %c0_58] : memref<1x128xf32, #tpu.memory_space<vmem>>, vector<1x128xf32>
    %78 = vector.broadcast %77 : vector<1x128xf32> to vector<64x128xf32>
    %79 = arith.addf %76, %78 : vector<64x128xf32>
    %cst_59 = arith.constant 0.00999999977 : f32
    %80 = vector.broadcast %cst_59 : f32 to vector<64x128xf32>
    %81 = arith.mulf %80, %79 : vector<64x128xf32>
    %82 = arith.maximumf %79, %81 : vector<64x128xf32>
    %c0_60 = arith.constant 0 : index
    %c0_61 = arith.constant 0 : index
    %c0_62 = arith.constant 0 : index
    %83 = vector.load %arg2[%c0_60, %c0_61, %c0_62] : memref<1x64x4xf32, #tpu.memory_space<vmem>>, vector<1x64x4xf32>
    %84 = vector.shape_cast %83 : vector<1x64x4xf32> to vector<64x4xf32>
    %c0_63 = arith.constant 0 : index
    %c0_64 = arith.constant 0 : index
    %85 = vector.load %arg9[%c0_63, %c0_64] : memref<4x128xf32, #tpu.memory_space<vmem>>, vector<4x128xf32>
    %cst_65 = arith.constant 0.000000e+00 : f32
    %86 = vector.broadcast %cst_65 : f32 to vector<64x128xf32>
    %87 = vector.extract_strided_slice %84 {offsets = [0, 0], sizes = [64, 1], strides = [1, 1]} : vector<64x4xf32> to vector<64x1xf32>
    %88 = vector.extract_strided_slice %85 {offsets = [0, 0], sizes = [1, 128], strides = [1, 1]} : vector<4x128xf32> to vector<1x128xf32>
    %89 = vector.broadcast %87 : vector<64x1xf32> to vector<64x128xf32>
    %90 = vector.broadcast %88 : vector<1x128xf32> to vector<64x128xf32>
    %91 = arith.mulf %89, %90 : vector<64x128xf32>
    %92 = arith.addf %86, %91 : vector<64x128xf32>
    %93 = vector.extract_strided_slice %84 {offsets = [0, 1], sizes = [64, 1], strides = [1, 1]} : vector<64x4xf32> to vector<64x1xf32>
    %94 = vector.extract_strided_slice %85 {offsets = [1, 0], sizes = [1, 128], strides = [1, 1]} : vector<4x128xf32> to vector<1x128xf32>
    %95 = vector.broadcast %93 : vector<64x1xf32> to vector<64x128xf32>
    %96 = vector.broadcast %94 : vector<1x128xf32> to vector<64x128xf32>
    %97 = arith.mulf %95, %96 : vector<64x128xf32>
    %98 = arith.addf %92, %97 : vector<64x128xf32>
    %99 = vector.extract_strided_slice %84 {offsets = [0, 2], sizes = [64, 1], strides = [1, 1]} : vector<64x4xf32> to vector<64x1xf32>
    %100 = vector.extract_strided_slice %85 {offsets = [2, 0], sizes = [1, 128], strides = [1, 1]} : vector<4x128xf32> to vector<1x128xf32>
    %101 = vector.broadcast %99 : vector<64x1xf32> to vector<64x128xf32>
    %102 = vector.broadcast %100 : vector<1x128xf32> to vector<64x128xf32>
    %103 = arith.mulf %101, %102 : vector<64x128xf32>
    %104 = arith.addf %98, %103 : vector<64x128xf32>
    %105 = vector.extract_strided_slice %84 {offsets = [0, 3], sizes = [64, 1], strides = [1, 1]} : vector<64x4xf32> to vector<64x1xf32>
    %106 = vector.extract_strided_slice %85 {offsets = [3, 0], sizes = [1, 128], strides = [1, 1]} : vector<4x128xf32> to vector<1x128xf32>
    %107 = vector.broadcast %105 : vector<64x1xf32> to vector<64x128xf32>
    %108 = vector.broadcast %106 : vector<1x128xf32> to vector<64x128xf32>
    %109 = arith.mulf %107, %108 : vector<64x128xf32>
    %110 = arith.addf %104, %109 : vector<64x128xf32>
    %c0_66 = arith.constant 0 : index
    %c0_67 = arith.constant 0 : index
    %111 = vector.load %arg10[%c0_66, %c0_67] : memref<1x128xf32, #tpu.memory_space<vmem>>, vector<1x128xf32>
    %112 = vector.broadcast %111 : vector<1x128xf32> to vector<64x128xf32>
    %113 = arith.mulf %110, %112 : vector<64x128xf32>
    %c0_68 = arith.constant 0 : index
    %c0_69 = arith.constant 0 : index
    %114 = vector.load %arg11[%c0_68, %c0_69] : memref<1x128xf32, #tpu.memory_space<vmem>>, vector<1x128xf32>
    %115 = vector.broadcast %114 : vector<1x128xf32> to vector<64x128xf32>
    %116 = arith.addf %113, %115 : vector<64x128xf32>
    %cst_70 = arith.constant 0.00999999977 : f32
    %117 = vector.broadcast %cst_70 : f32 to vector<64x128xf32>
    %118 = arith.mulf %117, %116 : vector<64x128xf32>
    %119 = arith.maximumf %116, %118 : vector<64x128xf32>
    %120 = arith.addf %82, %119 : vector<64x128xf32>
    %c0_71 = arith.constant 0 : index
    %c0_72 = arith.constant 0 : index
    %c0_73 = arith.constant 0 : index
    %121 = vector.load %arg12[%c0_71, %c0_72, %c0_73] : memref<1x64x128xf32, #tpu.memory_space<vmem>>, vector<1x64x128xf32>
    %122 = vector.shape_cast %121 : vector<1x64x128xf32> to vector<64x128xf32>
    %123 = vector.shape_cast %120 : vector<64x128xf32> to vector<1x64x128xf32>
    tpu.vector_store %arg12[%c0_71, %c0_72, %c0_73], %123 {strides = array<i32>} : memref<1x64x128xf32, #tpu.memory_space<vmem>>, vector<1x64x128xf32>,
    return
  }
  func.func @transform_0(%arg0: i32) -> (i32, i32, i32, i32, i32) {
    %c0_i32 = arith.constant 0 : i32
    %c0_i32_0 = arith.constant 0 : i32
    %c0_i32_1 = arith.constant 0 : i32
    %c0_i32_2 = arith.constant 0 : i32
    %c0_i32_3 = arith.constant 0 : i32
    return %arg0, %c0_i32, %c0_i32_0, %c0_i32_1, %c0_i32_2 : i32, i32, i32, i32, i32
  }
  func.func @transform_1(%arg0: i32) -> (i32, i32, i32) {
    %c0_i32 = arith.constant 0 : i32
    %c0_i32_0 = arith.constant 0 : i32
    %c0_i32_1 = arith.constant 0 : i32
    return %arg0, %c0_i32, %c0_i32_0 : i32, i32, i32
  }
  func.func @transform_2(%arg0: i32) -> (i32, i32, i32) {
    %c0_i32 = arith.constant 0 : i32
    %c0_i32_0 = arith.constant 0 : i32
    %c0_i32_1 = arith.constant 0 : i32
    %c0_i32_2 = arith.constant 0 : i32
    return %c0_i32, %c0_i32_0, %c0_i32_1 : i32, i32, i32
  }
  func.func @transform_3(%arg0: i32) -> (i32, i32) {
    %c0_i32 = arith.constant 0 : i32
    %c0_i32_0 = arith.constant 0 : i32
    %c0_i32_1 = arith.constant 0 : i32
    return %c0_i32, %c0_i32_0 : i32, i32
  }
  func.func @transform_4(%arg0: i32) -> (i32, i32) {
    %c0_i32 = arith.constant 0 : i32
    %c0_i32_0 = arith.constant 0 : i32
    %c0_i32_1 = arith.constant 0 : i32
    return %c0_i32, %c0_i32_0 : i32, i32
  }
  func.func @transform_5(%arg0: i32) -> (i32, i32) {
    %c0_i32 = arith.constant 0 : i32
    %c0_i32_0 = arith.constant 0 : i32
    %c0_i32_1 = arith.constant 0 : i32
    return %c0_i32, %c0_i32_0 : i32, i32
  }
  func.func @transform_6(%arg0: i32) -> (i32, i32) {
    %c0_i32 = arith.constant 0 : i32
    %c0_i32_0 = arith.constant 0 : i32
    %c0_i32_1 = arith.constant 0 : i32
    return %c0_i32, %c0_i32_0 : i32, i32
  }
  func.func @transform_7(%arg0: i32) -> (i32, i32) {
    %c0_i32 = arith.constant 0 : i32
    %c0_i32_0 = arith.constant 0 : i32
    %c0_i32_1 = arith.constant 0 : i32
    return %c0_i32, %c0_i32_0 : i32, i32
  }
  func.func @transform_8(%arg0: i32) -> (i32, i32) {
    %c0_i32 = arith.constant 0 : i32
    %c0_i32_0 = arith.constant 0 : i32
    %c0_i32_1 = arith.constant 0 : i32
    return %c0_i32, %c0_i32_0 : i32, i32
  }
  func.func @transform_9(%arg0: i32) -> (i32, i32) {
    %c0_i32 = arith.constant 0 : i32
    %c0_i32_0 = arith.constant 0 : i32
    %c0_i32_1 = arith.constant 0 : i32
    return %c0_i32, %c0_i32_0 : i32, i32
  }
  func.func @transform_10(%arg0: i32) -> (i32, i32) {
    %c0_i32 = arith.constant 0 : i32
    %c0_i32_0 = arith.constant 0 : i32
    %c0_i32_1 = arith.constant 0 : i32
    return %c0_i32, %c0_i32_0 : i32, i32
  }
  func.func @transform_11(%arg0: i32) -> (i32, i32, i32) {
    %c0_i32 = arith.constant 0 : i32
    %c0_i32_0 = arith.constant 0 : i32
    %c0_i32_1 = arith.constant 0 : i32
    return %arg0, %c0_i32, %c0_i32_0 : i32, i32, i32
  }
}

</mosaic_0001>

<bundles_post_ra>
// kernel: bottleneck_block_forward.2
= control target key start
LH: loop header
LB: loop body
LE: loop exit
PB: predicated region body
PF: predicated region fallthrough
CT: control target
= control target key end

     0   :  { %s1337_s15 = smov 0   ;;  %s2154_s0 = inlined_call_operand.vmem [shape: f32[512,4], index: 0, kind: input, shape index: {}]   ;;  %s2155_s1 = inlined_call_operand.vmem [shape: f32[4,64], index: 1, kind: input, shape index: {}]   ;;  %s2156_s2 = inlined_call_operand.vmem [shape: f32[1,64], index: 2, kind: input, shape index: {}]   ;;  %s2157_s3 = inlined_call_operand.vmem [shape: f32[1,64], index: 3, kind: input, shape index: {}]   ;;  %s2158_s4 = inlined_call_operand.vmem [shape: f32[512,64], index: 4, kind: output, shape index: {}]  }
   0x1 LB: > { %s1263_s16 = sadd.s32 4294967295, %s1306_s15   ;;  %p1267_p0 = scmp.ge.s32.totalorder %s1306_s15, 1  ;;  %s1306_s15 = sphi %s1337_s15, %s14_s15  }
   0x2   : > { %p163_p1 = scmp.lt.s32.totalorder %s1306_s15, 3 }
   0x4   : > { %p164_p2 = pnand %p1267_p0, %p163_p1 }
   0x6   : > { %167 = sbr.rel (%p164_p2) target bundleno = 493 (0x1ed), region = 36 }
   0xb   : > { %s1268_s17 = sshll.u32 %s1263_s16, 5  ;;  %v1308_v0 = vmov 0   ;;  %v1309_v33 = vmov 1   ;;  %v1561_v58 = vld [vmem:[%s2155_s1] sm:$0xf]  ;;  %v1310_v61 = vmov 2  }
   0xc   : > { %1288 = vset.pattern.permute.xlu2 %v1308_v0  ;;  %1287 = vset.pattern.permute.xlu1 %v1308_v0  ;;  %p190_p3 = scmp.lt.s32.totalorder %s1268_s17, 63  ;;  %2187 = vst [vmem:[#allocation15_spill] sm:$0xff] %v1561_v58  ;;  %v1564_v59 = vperm.slane %v1561_v58, 1  ;;  %v1568_v60 = vperm.slane %v1561_v58, 0  ;;  %vm1174_vm0 = vcmask 523264  }
   0xd   : > { %1286 = vset.pattern.permute.xlu0 %v1308_v0 }
   0xe   : > { %s2217_s17 = smov (!%p190_p3, %s1268_s17), 63 }
   0xf   : > { %s1269_s18 = sshll.u32 %s2217_s17, 3 }
  0x10   : > { %s1353_s21 = scalar_lea.vmem %s2154_s0, %s1269_s18  ;;  %s1951_s30 = scalar_lea.vmem %s2158_s4, %s1269_s18 }
  0x11   : > { %v1356_v1 = vld [vmem:[%s1353_s21 + $0x20] sm:$0xff]  ;;  %v1359_v2 = vld [vmem:[%s1353_s21 + $0x10] sm:$0xff]  ;;  %v1368_v4 = vld [vmem:[%s1353_s21 + $0x28] sm:$0xff] }
  0x12   : > { %v1362_v3 = vld [vmem:[%s1353_s21] sm:$0xff]  ;;  %256 = vperm.xlu2 %1288, %v1356_v1   ;;  %246 = vperm.xlu1 %1287, %v1359_v2   ;;  %2175 = vst [vmem:[#allocation3_spill] sm:$0xff] %v1368_v4  ;;  %v1371_v5 = vld [vmem:[%s1353_s21 + $0x18] sm:$0xff]  ;;  %v1374_v6 = vld [vmem:[%s1353_s21 + $0x8] sm:$0xff] }
  0x13   : > { %2174 = vst [vmem:[#allocation2_spill] sm:$0xff] %v1362_v3  ;;  %236 = vperm.xlu0 %1286, %v1362_v3   ;;  %v1380_v7 = vld [vmem:[%s1353_s21 + $0x40] sm:$0xff]  ;;  %v1383_v8 = vld [vmem:[%s1353_s21 + $0x38] sm:$0xff]  ;;  %v1386_v9 = vld [vmem:[%s1353_s21 + $0x30] sm:$0xff] }
  0x14   : > { %2176 = vst [vmem:[#allocation4_spill] sm:$0xff] %v1371_v5  ;;  %v1392_v10 = vld [vmem:[%s1353_s21 + $0x58] sm:$0xff]  ;;  %v1395_v11 = vld [vmem:[%s1353_s21 + $0x50] sm:$0xff]  ;;  %v1398_v12 = vld [vmem:[%s1353_s21 + $0x48] sm:$0xff] }
  0x15   : > { %2177 = vst [vmem:[#allocation5_spill] sm:$0xff] %v1374_v6  ;;  %v1404_v13 = vld [vmem:[%s1353_s21 + $0x70] sm:$0xff]  ;;  %v1407_v14 = vld [vmem:[%s1353_s21 + $0x68] sm:$0xff]  ;;  %v1410_v15 = vld [vmem:[%s1353_s21 + $0x60] sm:$0xff] }
  0x16   : > { %2178 = vst [vmem:[#allocation6_spill] sm:$0xff] %v1380_v7  ;;  %v1416_v16 = vld [vmem:[%s1353_s21 + $0x88] sm:$0xff]  ;;  %v1419_v17 = vld [vmem:[%s1353_s21 + $0x80] sm:$0xff]  ;;  %v1422_v18 = vld [vmem:[%s1353_s21 + $0x78] sm:$0xff] }
  0x17   : > { %2179 = vst [vmem:[#allocation7_spill] sm:$0xff] %v1392_v10  ;;  %v1428_v19 = vld [vmem:[%s1353_s21 + $0xa0] sm:$0xff]  ;;  %v1431_v20 = vld [vmem:[%s1353_s21 + $0x98] sm:$0xff]  ;;  %v1434_v21 = vld [vmem:[%s1353_s21 + $0x90] sm:$0xff] }
  0x18   : > { %2180 = vst [vmem:[#allocation8_spill] sm:$0xff] %v1395_v11  ;;  %v1440_v22 = vld [vmem:[%s1353_s21 + $0xb8] sm:$0xff]  ;;  %v1443_v23 = vld [vmem:[%s1353_s21 + $0xb0] sm:$0xff]  ;;  %v1446_v24 = vld [vmem:[%s1353_s21 + $0xa8] sm:$0xff] }
  0x19   : > { %v1452_v25 = vld [vmem:[%s1353_s21 + $0xd0] sm:$0xff]  ;;  %v1455_v26 = vld [vmem:[%s1353_s21 + $0xc8] sm:$0xff]  ;;  %v1458_v27 = vld [vmem:[%s1353_s21 + $0xc0] sm:$0xff] }
  0x1a   : > { %261 = vperm.xlu2 %1288, %v1368_v4   ;;  %251 = vperm.xlu1 %1287, %v1371_v5   ;;  %2181 = vst [vmem:[#allocation9_spill] sm:$0xff] %v1452_v25  ;;  %v1464_v28 = vld [vmem:[%s1353_s21 + $0xe8] sm:$0xff]  ;;  %v1467_v29 = vld [vmem:[%s1353_s21 + $0xe0] sm:$0xff]  ;;  %v1470_v30 = vld [vmem:[%s1353_s21 + $0xd8] sm:$0xff] }
  0x1b   : > { %241 = vperm.xlu0 %1286, %v1374_v6   ;;  %2182 = vst [vmem:[#allocation10_spill] sm:$0xff] %v1455_v26  ;;  %v1476_v31 = vld [vmem:[%s1353_s21 + $0xf8] sm:$0xff]  ;;  %v1479_v32 = vld [vmem:[%s1353_s21 + $0xf0] sm:$0xff] }
  0x1c   : > { %2183 = vst [vmem:[#allocation11_spill] sm:$0xff] %v1464_v28 }
  0x1d   : > { %2184 = vst [vmem:[#allocation12_spill] sm:$0xff] %v1467_v29 }
  0x1e   : > { %2185 = vst [vmem:[#allocation13_spill] sm:$0xff] %v1476_v31 }
  0x22   : > { %276 = vperm.xlu2 %1288, %v1380_v7   ;;  %271 = vperm.xlu1 %1287, %v1383_v8  }
  0x23   : > { %266 = vperm.xlu0 %1286, %v1386_v9  }
  0x2a   : > { %291 = vperm.xlu2 %1288, %v1392_v10   ;;  %286 = vperm.xlu1 %1287, %v1395_v11  }
  0x2b   : > { %281 = vperm.xlu0 %1286, %v1398_v12  }
  0x32   : > { %306 = vperm.xlu2 %1288, %v1404_v13   ;;  %301 = vperm.xlu1 %1287, %v1407_v14  }
  0x33   : > { %296 = vperm.xlu0 %1286, %v1410_v15  }
  0x3a   : > { %321 = vperm.xlu2 %1288, %v1416_v16   ;;  %316 = vperm.xlu1 %1287, %v1419_v17  }
  0x3b   : > { %311 = vperm.xlu0 %1286, %v1422_v18  }
  0x42   : > { %336 = vperm.xlu2 %1288, %v1428_v19   ;;  %331 = vperm.xlu1 %1287, %v1431_v20  }
  0x43   : > { %326 = vperm.xlu0 %1286, %v1434_v21  }
  0x4a   : > { %351 = vperm.xlu2 %1288, %v1440_v22   ;;  %346 = vperm.xlu1 %1287, %v1443_v23  }
  0x4b   : > { %341 = vperm.xlu0 %1286, %v1446_v24  }
  0x52   : > { %366 = vperm.xlu2 %1288, %v1452_v25   ;;  %361 = vperm.xlu1 %1287, %v1455_v26  }
  0x53   : > { %356 = vperm.xlu0 %1286, %v1458_v27  }
  0x5a   : > { %381 = vperm.xlu2 %1288, %v1464_v28   ;;  %376 = vperm.xlu1 %1287, %v1467_v29  }
  0x5b   : > { %371 = vperm.xlu0 %1286, %v1470_v30  }
  0x62   : > { %1289 = vset.pattern.permute.xlu2 %v1309_v33  ;;  %391 = vperm.xlu1 %1287, %v1476_v31  }
  0x63   : > { %386 = vperm.xlu0 %1286, %v1479_v32   ;;  %460 = vperm.xlu2 %1289, %v1362_v3  }
  0x6a   : > { %1291 = vset.pattern.permute.xlu1 %v1309_v33 }
  0x6b   : > { %1290 = vset.pattern.permute.xlu0 %v1309_v33  ;;  %468 = vperm.xlu1 %1291, %v1359_v2  }
  0x6c   : > { %472 = vperm.xlu2 %1289, %v1371_v5   ;;  %464 = vperm.xlu0 %1290, %v1374_v6   ;;  %v1487_v34 = vpop.permute.xlu2 %256 }
  0x73   : > { %476 = vperm.xlu1 %1291, %v1356_v1  }
  0x74   : > { %480 = vperm.xlu2 %1289, %v1368_v4   ;;  %484 = vperm.xlu0 %1290, %v1386_v9   ;;  %v1492_v35 = vpop.permute.xlu2 %261 }
  0x7b   : > { %488 = vperm.xlu1 %1291, %v1383_v8  }
  0x7c   : > { %492 = vperm.xlu2 %1289, %v1380_v7   ;;  %496 = vperm.xlu0 %1290, %v1398_v12   ;;  %v1497_v36 = vpop.permute.xlu2 %276 }
  0x83   : > { %500 = vperm.xlu1 %1291, %v1395_v11  }
  0x84   : > { %504 = vperm.xlu2 %1289, %v1392_v10   ;;  %508 = vperm.xlu0 %1290, %v1410_v15   ;;  %v1502_v37 = vpop.permute.xlu2 %291  ;;  %v1504_v38 = vpop.permute.xlu1 %246 }
  0x85   : > { %v237_v39 = vpop.permute.xlu0 %236 }
  0x86   : > { %v395_v33 = vmul.f32 %v1568_v60, %v237_v39 }
  0x8b   : > { %512 = vperm.xlu1 %1291, %v1407_v14  }
  0x8c   : > { %516 = vperm.xlu2 %1289, %v1404_v13   ;;  %520 = vperm.xlu0 %1290, %v1422_v18   ;;  %v1509_v40 = vpop.permute.xlu2 %306  ;;  %v252_v41 = vpop.permute.xlu1 %251 }
  0x8d   : > { %v1511_v42 = vpop.permute.xlu0 %241 }
  0x93   : > { %524 = vperm.xlu1 %1291, %v1419_v17  }
  0x94   : > { %528 = vperm.xlu2 %1289, %v1416_v16   ;;  %532 = vperm.xlu0 %1290, %v1434_v21   ;;  %v1516_v43 = vpop.permute.xlu2 %321  ;;  %v1518_v44 = vpop.permute.xlu1 %271 }
  0x95   : > { %v1520_v45 = vpop.permute.xlu0 %266 }
  0x9b   : > { %536 = vperm.xlu1 %1291, %v1431_v20  }
  0x9c   : > { %540 = vperm.xlu2 %1289, %v1428_v19   ;;  %544 = vperm.xlu0 %1290, %v1446_v24   ;;  %v1525_v46 = vpop.permute.xlu2 %336  ;;  %v1527_v47 = vpop.permute.xlu1 %286 }
  0x9d   : > { %v1529_v48 = vpop.permute.xlu0 %281 }
  0xa3   : > { %548 = vperm.xlu1 %1291, %v1443_v23  }
  0xa4   : > { %552 = vperm.xlu2 %1289, %v1440_v22   ;;  %556 = vperm.xlu0 %1290, %v1458_v27   ;;  %v1534_v49 = vpop.permute.xlu2 %351  ;;  %v1536_v50 = vpop.permute.xlu1 %301 }
  0xa5   : > { %v1538_v51 = vpop.permute.xlu0 %296 }
  0xab   : > { %560 = vperm.xlu1 %1291, %v1455_v26  }
  0xac   : > { %564 = vperm.xlu2 %1289, %v1452_v25   ;;  %568 = vperm.xlu0 %1290, %v1470_v30   ;;  %v1543_v52 = vpop.permute.xlu2 %366  ;;  %v1545_v53 = vpop.permute.xlu1 %316 }
  0xad   : > { %v1547_v54 = vpop.permute.xlu0 %311 }
  0xb3   : > { %572 = vperm.xlu1 %1291, %v1467_v29  }
  0xb4   : > { %576 = vperm.xlu2 %1289, %v1464_v28   ;;  %580 = vperm.xlu0 %1290, %v1479_v32   ;;  %v1552_v55 = vpop.permute.xlu2 %381  ;;  %v1554_v56 = vpop.permute.xlu1 %331 }
  0xb5   : > { %2186 = vst [vmem:[#allocation14_spill] sm:$0xff] %v1552_v55  ;;  %v1556_v57 = vpop.permute.xlu0 %326 }
  0xbb   : > { %584 = vperm.xlu1 %1291, %v1476_v31  }
  0xbc   : > { %1292 = vset.pattern.permute.xlu2 %v1310_v61  ;;  %1293 = vset.pattern.permute.xlu0 %v1310_v61  ;;  %v1570_v62 = vpop.permute.xlu1 %346 }
  0xbd   : > { %2188 = vst [vmem:[#allocation16_spill] sm:$0xff] %v1570_v62  ;;  %653 = vperm.xlu2 %1292, %v1362_v3   ;;  %657 = vperm.xlu0 %1293, %v1374_v6   ;;  %v1574_v63 = vpop.permute.xlu0 %341  ;;  %v461_v0 = vpop.permute.xlu2 %460 }
  0xbe   : > { %2189 = vst [vmem:[#allocation17_spill] sm:$0xff] %v1574_v63  ;;  %v588_v55 = vmul.f32 %v1564_v59, %v461_v0  ;;  %v398_v63 = vmul.f32 %v1568_v60, %v252_v41 }
  0xc0   : > { %v1578_v31 = vadd.f32 %v588_v55, %v395_v33  ;;  %v400_v33 = vmul.f32 %v1568_v60, %v1492_v35 }
  0xc3   : > { %1294 = vset.pattern.permute.xlu1 %v1310_v61 }
  0xc4   : > { %661 = vperm.xlu1 %1294, %v1359_v2   ;;  %v1581_v58 = vpop.permute.xlu1 %361 }
  0xc5   : > { %665 = vperm.xlu2 %1292, %v1371_v5   ;;  %677 = vperm.xlu0 %1293, %v1386_v9   ;;  %v1585_v3 = vpop.permute.xlu0 %356 }
  0xc6   : > { %v473_v62 = vpop.permute.xlu2 %472 }
  0xc7   : > { %v591_v39 = vmul.f32 %v1564_v59, %v473_v62 }
  0xc9   : > { %v1589_v6 = vadd.f32 %v591_v39, %v398_v63 }
  0xcc   : > { %669 = vperm.xlu1 %1294, %v1356_v1   ;;  %v1592_v55 = vpop.permute.xlu1 %376 }
  0xcd   : > { %2190 = vst [vmem:[#allocation18_spill] sm:$0xff] %v1592_v55  ;;  %673 = vperm.xlu2 %1292, %v1368_v4   ;;  %689 = vperm.xlu0 %1293, %v1398_v12   ;;  %v1596_v61 = vpop.permute.xlu0 %371  ;;  %v403_v4 = vmul.f32 %v1568_v60, %v1497_v36  ;;  %v406_v36 = vmul.f32 %v1568_v60, %v1502_v37 }
  0xce   : > { %v481_v0 = vpop.permute.xlu2 %480 }
  0xcf   : > { %v593_v41 = vmul.f32 %v1564_v59, %v481_v0 }
  0xd1   : > { %v1601_v5 = vadd.f32 %v593_v41, %v400_v33  ;;  %v397_v33 = vmul.f32 %v1568_v60, %v1504_v38  ;;  %v399_v38 = vmul.f32 %v1568_v60, %v1487_v34 }
  0xd4   : > { %681 = vperm.xlu1 %1294, %v1383_v8   ;;  %v1604_v62 = vpop.permute.xlu1 %391 }
  0xd5   : > { %2191 = vst [vmem:[#allocation19_spill] sm:$0xff] %v1604_v62  ;;  %685 = vperm.xlu2 %1292, %v1380_v7   ;;  %701 = vperm.xlu0 %1293, %v1410_v15   ;;  %v1608_v63 = vpop.permute.xlu0 %386 }
  0xd6   : > { %v493_v39 = vpop.permute.xlu2 %492 }
  0xd7   : > { %v596_v35 = vmul.f32 %v1564_v59, %v493_v39 }
  0xd9   : > { %v1613_v55 = vadd.f32 %v596_v35, %v403_v4  ;;  %v396_v4 = vmul.f32 %v1568_v60, %v1511_v42 }
  0xdb   : > { %2192 = vst [vmem:[#allocation20_spill] sm:$0xff] %v1613_v55 }
  0xdc   : > { %693 = vperm.xlu1 %1294, %v1395_v11  }
  0xdd   : > { %697 = vperm.xlu2 %1292, %v1392_v10   ;;  %713 = vperm.xlu0 %1293, %v1422_v18   ;;  %v469_v0 = vpop.permute.xlu1 %468 }
  0xde   : > { %v590_v41 = vmul.f32 %v1564_v59, %v469_v0  ;;  %v505_v7 = vpop.permute.xlu2 %504  ;;  %v465_v62 = vpop.permute.xlu0 %464  ;;  %v409_v0 = vmul.f32 %v1568_v60, %v1509_v40  ;;  %v402_v40 = vmul.f32 %v1568_v60, %v1518_v44  ;;  %v405_v44 = vmul.f32 %v1568_v60, %v1527_v47 }
  0xdf   : > { %v599_v39 = vmul.f32 %v1564_v59, %v505_v7  ;;  %v589_v35 = vmul.f32 %v1564_v59, %v465_v62  ;;  %v408_v47 = vmul.f32 %v1568_v60, %v1536_v50  ;;  %v411_v50 = vmul.f32 %v1568_v60, %v1545_v53 }
  0xe0   : > { %v1627_v10 = vadd.f32 %v590_v41, %v397_v33  ;;  %v401_v33 = vmul.f32 %v1568_v60, %v1520_v45  ;;  %v1311_v53 = vmov 3  }
  0xe1   : > { %v1629_v11 = vadd.f32 %v599_v39, %v406_v36  ;;  %v1631_v55 = vadd.f32 %v589_v35, %v396_v4 }
  0xe4   : > { %705 = vperm.xlu1 %1294, %v1407_v14  }
  0xe5   : > { %709 = vperm.xlu2 %1292, %v1404_v13   ;;  %725 = vperm.xlu0 %1293, %v1434_v21   ;;  %v477_v37 = vpop.permute.xlu1 %476 }
  0xe6   : > { %v592_v7 = vmul.f32 %v1564_v59, %v477_v37  ;;  %v517_v42 = vpop.permute.xlu2 %516  ;;  %v485_v62 = vpop.permute.xlu0 %484 }
  0xe7   : > { %v602_v41 = vmul.f32 %v1564_v59, %v517_v42  ;;  %v594_v36 = vmul.f32 %v1564_v59, %v485_v62 }
  0xe8   : > { %v1645_v4 = vadd.f32 %v592_v7, %v399_v38  ;;  %v412_v38 = vmul.f32 %v1568_v60, %v1516_v43  ;;  %v404_v7 = vmul.f32 %v1568_v60, %v1529_v48 }
  0xe9   : > { %v1647_v39 = vadd.f32 %v602_v41, %v409_v0  ;;  %v1649_v35 = vadd.f32 %v594_v36, %v401_v33 }
  0xec   : > { %717 = vperm.xlu1 %1294, %v1419_v17  }
  0xed   : > { %721 = vperm.xlu2 %1292, %v1416_v16   ;;  %737 = vperm.xlu0 %1293, %v1446_v24   ;;  %v489_v34 = vpop.permute.xlu1 %488 }
  0xee   : > { %v595_v45 = vmul.f32 %v1564_v59, %v489_v34  ;;  %v529_v37 = vpop.permute.xlu2 %528  ;;  %v497_v42 = vpop.permute.xlu0 %496 }
  0xef   : > { %v605_v62 = vmul.f32 %v1564_v59, %v529_v37  ;;  %v597_v0 = vmul.f32 %v1564_v59, %v497_v42 }
  0xf0   : > { %v1663_v33 = vadd.f32 %v595_v45, %v402_v40  ;;  %v415_v40 = vmul.f32 %v1568_v60, %v1525_v46  ;;  %v407_v45 = vmul.f32 %v1568_v60, %v1538_v51 }
  0xf1   : > { %v1665_v41 = vadd.f32 %v605_v62, %v412_v38  ;;  %v1667_v36 = vadd.f32 %v597_v0, %v404_v7 }
  0xf4   : > { %729 = vperm.xlu1 %1294, %v1431_v20  }
  0xf5   : > { %733 = vperm.xlu2 %1292, %v1428_v19   ;;  %749 = vperm.xlu0 %1293, %v1458_v27   ;;  %v501_v43 = vpop.permute.xlu1 %500 }
  0xf6   : > { %v598_v48 = vmul.f32 %v1564_v59, %v501_v43  ;;  %v541_v34 = vpop.permute.xlu2 %540  ;;  %v509_v37 = vpop.permute.xlu0 %508 }
  0xf7   : > { %v608_v42 = vmul.f32 %v1564_v59, %v541_v34  ;;  %v600_v38 = vmul.f32 %v1564_v59, %v509_v37 }
  0xf8   : > { %v1681_v7 = vadd.f32 %v598_v48, %v405_v44  ;;  %v418_v44 = vmul.f32 %v1568_v60, %v1534_v49  ;;  %v410_v48 = vmul.f32 %v1568_v60, %v1547_v54 }
  0xf9   : > { %v1683_v62 = vadd.f32 %v608_v42, %v415_v40  ;;  %v1685_v0 = vadd.f32 %v600_v38, %v407_v45 }
  0xfc   : > { %741 = vperm.xlu1 %1294, %v1443_v23  }
  0xfd   : > { %745 = vperm.xlu2 %1292, %v1440_v22   ;;  %761 = vperm.xlu0 %1293, %v1470_v30   ;;  %v513_v46 = vpop.permute.xlu1 %512 }
  0xfe   : > { %v601_v51 = vmul.f32 %v1564_v59, %v513_v46  ;;  %v553_v43 = vpop.permute.xlu2 %552  ;;  %v521_v34 = vpop.permute.xlu0 %520 }
  0xff   : > { %v611_v37 = vmul.f32 %v1564_v59, %v553_v43  ;;  %v603_v40 = vmul.f32 %v1564_v59, %v521_v34 }
 0x100   : > { %v1699_v45 = vadd.f32 %v601_v51, %v408_v47  ;;  %v421_v47 = vmul.f32 %v1568_v60, %v1543_v52  ;;  %v413_v51 = vmul.f32 %v1568_v60, %v1556_v57  ;;  %v414_v57 = vmul.f32 %v1568_v60, %v1554_v56 }
 0x101   : > { %v1701_v42 = vadd.f32 %v611_v37, %v418_v44  ;;  %v1703_v38 = vadd.f32 %v603_v40, %v410_v48 }
 0x104   : > { %753 = vperm.xlu1 %1294, %v1455_v26   ;;  %v2201_v26 = vld [vmem:[#allocation2_spill] sm:$0xff] }
 0x105   : > { %757 = vperm.xlu2 %1292, %v1452_v25   ;;  %773 = vperm.xlu0 %1293, %v1479_v32   ;;  %v525_v49 = vpop.permute.xlu1 %524  ;;  %v2200_v25 = vld [vmem:[#allocation16_spill] sm:$0xff] }
 0x106   : > { %v604_v54 = vmul.f32 %v1564_v59, %v525_v49  ;;  %v565_v46 = vpop.permute.xlu2 %564  ;;  %v533_v43 = vpop.permute.xlu0 %532 }
 0x107   : > { %v614_v34 = vmul.f32 %v1564_v59, %v565_v46  ;;  %v606_v44 = vmul.f32 %v1564_v59, %v533_v43  ;;  %v2195_v43 = vld [vmem:[#allocation5_spill] sm:$0xff] }
 0x108   : > { %v1717_v48 = vadd.f32 %v604_v54, %v411_v50  ;;  %v2196_v54 = vld [vmem:[#allocation14_spill] sm:$0xff] }
 0x109   : > { %v1719_v37 = vadd.f32 %v614_v34, %v421_v47  ;;  %v1721_v40 = vadd.f32 %v606_v44, %v413_v51  ;;  %v424_v47 = vmul.f32 %v1568_v60, %v2196_v54  ;;  %v2197_v51 = vld [vmem:[#allocation17_spill] sm:$0xff] }
 0x10a   : > { %2193 = vst [vmem:[#allocation21_spill] sm:$0xff] %v1717_v48  ;;  %v416_v34 = vmul.f32 %v1568_v60, %v2197_v51  ;;  %v417_v51 = vmul.f32 %v1568_v60, %v2200_v25 }
 0x10b   : > { %2194 = vst [vmem:[#allocation22_spill] sm:$0xff] %v1719_v37 }
 0x10c   : > { %765 = vperm.xlu1 %1294, %v1467_v29  }
 0x10d   : > { %769 = vperm.xlu2 %1292, %v1464_v28   ;;  %1296 = vset.pattern.permute.xlu0 %v1311_v53  ;;  %v537_v52 = vpop.permute.xlu1 %536 }
 0x10e   : > { %v607_v49 = vmul.f32 %v1564_v59, %v537_v52  ;;  %v577_v46 = vpop.permute.xlu2 %576  ;;  %850 = vperm.xlu0 %1296, %v2195_v43   ;;  %v545_v50 = vpop.permute.xlu0 %544  ;;  %v2198_v52 = vld [vmem:[#allocation13_spill] sm:$0xff]  ;;  %v2199_v43 = vld [vmem:[#allocation15_spill] sm:$0xff] }
 0x10f   : > { %v617_v44 = vmul.f32 %v1564_v59, %v577_v46  ;;  %v609_v28 = vmul.f32 %v1564_v59, %v545_v50  ;;  %v1743_v48 = vperm.slane %v2199_v43, 2 }
 0x110   : > { %v1735_v29 = vadd.f32 %v607_v49, %v414_v57 }
 0x111   : > { %v1737_v37 = vadd.f32 %v617_v44, %v424_v47  ;;  %v1739_v56 = vadd.f32 %v609_v28, %v416_v34  ;;  %v419_v28 = vmul.f32 %v1568_v60, %v1585_v3 }
 0x114   : > { %777 = vperm.xlu1 %1294, %v2198_v52  }
 0x115   : > { %1295 = vset.pattern.permute.xlu2 %v1311_v53  ;;  %v549_v54 = vpop.permute.xlu1 %548 }
 0x116   : > { %v610_v46 = vmul.f32 %v1564_v59, %v549_v54  ;;  %846 = vperm.xlu2 %1295, %v2201_v26   ;;  %870 = vperm.xlu0 %1296, %v1386_v9   ;;  %v557_v57 = vpop.permute.xlu0 %556  ;;  %v420_v26 = vmul.f32 %v1568_v60, %v1581_v58  ;;  %v2202_v54 = vld [vmem:[#allocation4_spill] sm:$0xff] }
 0x117   : > { %v612_v49 = vmul.f32 %v1564_v59, %v557_v57  ;;  %v654_v50 = vpop.permute.xlu2 %653 }
 0x118   : > { %v1753_v47 = vadd.f32 %v610_v46, %v417_v51  ;;  %v781_v34 = vmul.f32 %v1743_v48, %v654_v50  ;;  %v422_v46 = vmul.f32 %v1568_v60, %v1596_v61 }
 0x119   : > { %v1756_v44 = vadd.f32 %v612_v49, %v419_v28 }
 0x11a   : > { %v1759_v25 = vadd.f32 %v781_v34, %v1578_v31  ;;  %v2204_v34 = vld [vmem:[#allocation3_spill] sm:$0xff] }
 0x11c   : > { %1297 = vset.pattern.permute.xlu1 %v1311_v53 }
 0x11d   : > { %854 = vperm.xlu1 %1297, %v1359_v2   ;;  %v561_v9 = vpop.permute.xlu1 %560 }
 0x11e   : > { %v613_v3 = vmul.f32 %v1564_v59, %v561_v9  ;;  %858 = vperm.xlu2 %1295, %v2202_v54   ;;  %882 = vperm.xlu0 %1296, %v1398_v12   ;;  %v569_v51 = vpop.permute.xlu0 %568  ;;  %v2203_v12 = vld [vmem:[#allocation18_spill] sm:$0xff] }
 0x11f   : > { %v615_v31 = vmul.f32 %v1564_v59, %v569_v51  ;;  %v666_v57 = vpop.permute.xlu2 %665  ;;  %v423_v50 = vmul.f32 %v1568_v60, %v2203_v12 }
 0x120   : > { %v1770_v53 = vadd.f32 %v613_v3, %v420_v26  ;;  %v784_v2 = vmul.f32 %v1743_v48, %v666_v57  ;;  %v425_v26 = vmul.f32 %v1568_v60, %v1608_v63 }
 0x121   : > { %v1773_v28 = vadd.f32 %v615_v31, %v422_v46 }
 0x122   : > { %v1776_v58 = vadd.f32 %v784_v2, %v1589_v6  ;;  %v2206_v2 = vld [vmem:[#allocation6_spill] sm:$0xff] }
 0x125   : > { %862 = vperm.xlu1 %1297, %v1356_v1   ;;  %v573_v49 = vpop.permute.xlu1 %572 }
 0x126   : > { %v616_v61 = vmul.f32 %v1564_v59, %v573_v49  ;;  %866 = vperm.xlu2 %1295, %v2204_v34   ;;  %894 = vperm.xlu0 %1296, %v1410_v15   ;;  %v581_v9 = vpop.permute.xlu0 %580  ;;  %v2205_v15 = vld [vmem:[#allocation19_spill] sm:$0xff]  ;;  %v2207_v34 = vld [vmem:[#allocation20_spill] sm:$0xff] }
 0x127   : > { %v618_v3 = vmul.f32 %v1564_v59, %v581_v9  ;;  %v674_v6 = vpop.permute.xlu2 %673  ;;  %v426_v57 = vmul.f32 %v1568_v60, %v2205_v15  ;;  %v2208_v60 = vld [vmem:[#allocation8_spill] sm:$0xff] }
 0x128   : > { %v1787_v54 = vadd.f32 %v616_v61, %v423_v50  ;;  %v786_v1 = vmul.f32 %v1743_v48, %v674_v6 }
 0x129   : > { %v1790_v51 = vadd.f32 %v618_v3, %v425_v26 }
 0x12a   : > { %v1793_v46 = vadd.f32 %v786_v1, %v1601_v5 }
 0x12d   : > { %874 = vperm.xlu1 %1297, %v1383_v8   ;;  %v585_v31 = vpop.permute.xlu1 %584 }
 0x12e   : > { %v619_v63 = vmul.f32 %v1564_v59, %v585_v31  ;;  %878 = vperm.xlu2 %1295, %v2206_v2   ;;  %906 = vperm.xlu0 %1296, %v1422_v18   ;;  %v2209_v59 = vld [vmem:[#allocation7_spill] sm:$0xff] }
 0x12f   : > { %v686_v49 = vpop.permute.xlu2 %685  ;;  %v658_v12 = vpop.permute.xlu0 %657 }
 0x130   : > { %v1801_v50 = vadd.f32 %v619_v63, %v426_v57  ;;  %v789_v61 = vmul.f32 %v1743_v48, %v686_v49  ;;  %v782_v5 = vmul.f32 %v1743_v48, %v658_v12 }
 0x132   : > { %v1806_v8 = vadd.f32 %v789_v61, %v2207_v34  ;;  %v1809_v9 = vadd.f32 %v782_v5, %v1631_v55 }
 0x135   : > { %886 = vperm.xlu1 %1297, %v2208_v60  }
 0x136   : > { %890 = vperm.xlu2 %1295, %v2209_v59   ;;  %918 = vperm.xlu0 %1296, %v1434_v21   ;;  %v662_v18 = vpop.permute.xlu1 %661 }
 0x137   : > { %v783_v26 = vmul.f32 %v1743_v48, %v662_v18  ;;  %v698_v3 = vpop.permute.xlu2 %697  ;;  %v678_v6 = vpop.permute.xlu0 %677 }
 0x138   : > { %v792_v1 = vmul.f32 %v1743_v48, %v698_v3  ;;  %v787_v31 = vmul.f32 %v1743_v48, %v678_v6 }
 0x139   : > { %v1818_v15 = vadd.f32 %v783_v26, %v1627_v10 }
 0x13a   : > { %v1821_v55 = vadd.f32 %v792_v1, %v1629_v11  ;;  %v1824_v57 = vadd.f32 %v787_v31, %v1649_v35 }
 0x13d   : > { %898 = vperm.xlu1 %1297, %v1407_v14  }
 0x13e   : > { %902 = vperm.xlu2 %1295, %v1404_v13   ;;  %930 = vperm.xlu0 %1296, %v1446_v24   ;;  %v670_v21 = vpop.permute.xlu1 %669 }
 0x13f   : > { %v785_v63 = vmul.f32 %v1743_v48, %v670_v21  ;;  %v710_v2 = vpop.permute.xlu2 %709  ;;  %v690_v49 = vpop.permute.xlu0 %689 }
 0x140   : > { %v795_v10 = vmul.f32 %v1743_v48, %v710_v2  ;;  %v790_v12 = vmul.f32 %v1743_v48, %v690_v49  ;;  %v2212_v49 = vld [vmem:[#allocation21_spill] sm:$0xff] }
 0x141   : > { %v1833_v11 = vadd.f32 %v785_v63, %v1645_v4 }
 0x142   : > { %v1836_v35 = vadd.f32 %v795_v10, %v1647_v39  ;;  %v1839_v14 = vadd.f32 %v790_v12, %v1667_v36 }
 0x145   : > { %910 = vperm.xlu1 %1297, %v1419_v17  }
 0x146   : > { %914 = vperm.xlu2 %1295, %v1416_v16   ;;  %942 = vperm.xlu0 %1296, %v1458_v27   ;;  %v682_v13 = vpop.permute.xlu1 %681 }
 0x147   : > { %v788_v24 = vmul.f32 %v1743_v48, %v682_v13  ;;  %v722_v61 = vpop.permute.xlu2 %721  ;;  %v702_v5 = vpop.permute.xlu0 %701  ;;  %v2214_v13 = vld [vmem:[#allocation12_spill] sm:$0xff] }
 0x148   : > { %v798_v4 = vmul.f32 %v1743_v48, %v722_v61  ;;  %v793_v34 = vmul.f32 %v1743_v48, %v702_v5 }
 0x149   : > { %v1848_v39 = vadd.f32 %v788_v24, %v1663_v33  ;;  %v2215_v24 = vld [vmem:[#allocation11_spill] sm:$0xff] }
 0x14a   : > { %v1851_v36 = vadd.f32 %v798_v4, %v1665_v41  ;;  %v1854_v17 = vadd.f32 %v793_v34, %v1685_v0 }
 0x14d   : > { %922 = vperm.xlu1 %1297, %v1431_v20  }
 0x14e   : > { %926 = vperm.xlu2 %1295, %v1428_v19   ;;  %954 = vperm.xlu0 %1296, %v1470_v30   ;;  %v694_v16 = vpop.permute.xlu1 %693 }
 0x14f   : > { %v791_v27 = vmul.f32 %v1743_v48, %v694_v16  ;;  %v734_v60 = vpop.permute.xlu2 %733  ;;  %v714_v59 = vpop.permute.xlu0 %713 }
 0x150   : > { %v801_v33 = vmul.f32 %v1743_v48, %v734_v60  ;;  %v796_v18 = vmul.f32 %v1743_v48, %v714_v59 }
 0x151   : > { %v1863_v41 = vadd.f32 %v791_v27, %v1681_v7 }
 0x152   : > { %v1866_v0 = vadd.f32 %v801_v33, %v1683_v62  ;;  %v1869_v20 = vadd.f32 %v796_v18, %v1703_v38  ;;  %v1916_v33 = vperm.slane %v2199_v43, 3 }
 0x155   : > { %934 = vperm.xlu1 %1297, %v1443_v23  }
 0x156   : > { %938 = vperm.xlu2 %1295, %v1440_v22   ;;  %966 = vperm.xlu0 %1296, %v1479_v32   ;;  %v706_v19 = vpop.permute.xlu1 %705  ;;  %v2210_v22 = vld [vmem:[#allocation10_spill] sm:$0xff]  ;;  %v2211_v32 = vld [vmem:[#allocation9_spill] sm:$0xff] }
 0x157   : > { %v794_v30 = vmul.f32 %v1743_v48, %v706_v19  ;;  %v746_v26 = vpop.permute.xlu2 %745  ;;  %v726_v3 = vpop.permute.xlu0 %725 }
 0x158   : > { %v804_v7 = vmul.f32 %v1743_v48, %v746_v26  ;;  %v799_v6 = vmul.f32 %v1743_v48, %v726_v3 }
 0x159   : > { %v1878_v62 = vadd.f32 %v794_v30, %v1699_v45 }
 0x15a   : > { %v1881_v38 = vadd.f32 %v804_v7, %v1701_v42  ;;  %v1884_v23 = vadd.f32 %v799_v6, %v1721_v40  ;;  %v2213_v42 = vld [vmem:[#allocation22_spill] sm:$0xff] }
 0x15d   : > { %946 = vperm.xlu1 %1297, %v2210_v22  }
 0x15e   : > { %950 = vperm.xlu2 %1295, %v2211_v32   ;;  %v718_v1 = vpop.permute.xlu1 %717 }
 0x15f   : > { %v797_v31 = vmul.f32 %v1743_v48, %v718_v1  ;;  %v758_v21 = vpop.permute.xlu2 %757  ;;  %v738_v63 = vpop.permute.xlu0 %737 }
 0x160   : > { %v807_v2 = vmul.f32 %v1743_v48, %v758_v21  ;;  %v802_v45 = vmul.f32 %v1743_v48, %v738_v63 }
 0x161   : > { %v1892_v10 = vadd.f32 %v797_v31, %v2212_v49 }
 0x162   : > { %v1895_v12 = vadd.f32 %v807_v2, %v2213_v42  ;;  %v1898_v40 = vadd.f32 %v802_v45, %v1739_v56 }
 0x165   : > { %958 = vperm.xlu1 %1297, %v2214_v13  }
 0x166   : > { %962 = vperm.xlu2 %1295, %v2215_v24   ;;  %v730_v61 = vpop.permute.xlu1 %729 }
 0x167   : > { %v800_v5 = vmul.f32 %v1743_v48, %v730_v61  ;;  %v770_v4 = vpop.permute.xlu2 %769  ;;  %v750_v34 = vpop.permute.xlu0 %749 }
 0x168   : > { %v810_v16 = vmul.f32 %v1743_v48, %v770_v4  ;;  %v805_v27 = vmul.f32 %v1743_v48, %v750_v34 }
 0x169   : > { %v1906_v60 = vadd.f32 %v800_v5, %v1735_v29 }
 0x16a   : > { %v1909_v59 = vadd.f32 %v810_v16, %v1737_v37  ;;  %v1912_v56 = vadd.f32 %v805_v27, %v1756_v44  ;;  %v1926_v37 = vld [vmem:[%s2156_s2] ss:$0 sm:$0xff] }
 0x16b   : > { %v1935_v44 = vld [vmem:[%s2157_s3] ss:$0 sm:$0xff] }
 0x16d   : > { %970 = vperm.xlu1 %1297, %v2198_v52  }
 0x16e   : > { %v742_v18 = vpop.permute.xlu1 %741 }
 0x16f   : > { %v803_v19 = vmul.f32 %v1743_v48, %v742_v18  ;;  %v762_v30 = vpop.permute.xlu0 %761 }
 0x170   : > { %v808_v26 = vmul.f32 %v1743_v48, %v762_v30  ;;  %v847_v3 = vpop.permute.xlu2 %846 }
 0x171   : > { %v1921_v29 = vadd.f32 %v803_v19, %v1753_v47  ;;  %v974_v52 = vmul.f32 %v1916_v33, %v847_v3 }
 0x172   : > { %v1930_v43 = vadd.f32 %v808_v26, %v1773_v28 }
 0x173   : > { %v1006_v7 = vadd.f32 %v974_v52, %v1759_v25 }
 0x175   : > { %v1042_v47 = vmul.f32 %v1926_v37, %v1006_v7 }
 0x176   : > { %v754_v6 = vpop.permute.xlu1 %753 }
 0x177   : > { %v1078_v22 = vadd.f32 %v1935_v44, %v1042_v47  ;;  %v806_v32 = vmul.f32 %v1743_v48, %v754_v6  ;;  %v774_v1 = vpop.permute.xlu0 %773 }
 0x178   : > { %v811_v31 = vmul.f32 %v1743_v48, %v774_v1  ;;  %v859_v21 = vpop.permute.xlu2 %858 }
 0x179   : > { %v1110_v28 = vmul.f32 0.01, %v1078_v22  ;;  %v1943_v63 = vadd.f32 %v806_v32, %v1770_v53  ;;  %v977_v2 = vmul.f32 %v1916_v33, %v859_v21 }
 0x17a   : > { %v1954_v25 = vadd.f32 %v811_v31, %v1790_v51 }
 0x17b   : > { %v1142_v45 = vmax.f32 %v1078_v22, %v1110_v28  ;;  %v1009_v49 = vadd.f32 %v977_v2, %v1776_v58 }
 0x17d   : > { %1175 = vst.msk [vmem:[%s1951_s30] sm:$0xff] %vm1174_vm0, %v1142_v45  ;;  %v1045_v53 = vmul.f32 %v1926_v37, %v1009_v49 }
 0x17e   : > { %v766_v42 = vpop.permute.xlu1 %765 }
 0x17f   : > { %v1081_v13 = vadd.f32 %v1935_v44, %v1045_v53  ;;  %v809_v24 = vmul.f32 %v1743_v48, %v766_v42 }
 0x180   : > { %v867_v61 = vpop.permute.xlu2 %866  ;;  %v851_v5 = vpop.permute.xlu0 %850 }
 0x181   : > { %v1113_v4 = vmul.f32 0.01, %v1081_v13  ;;  %v1963_v34 = vadd.f32 %v809_v24, %v1787_v54  ;;  %v979_v51 = vmul.f32 %v1916_v33, %v867_v61  ;;  %v975_v16 = vmul.f32 %v1916_v33, %v851_v5 }
 0x183   : > { %v1145_v58 = vmax.f32 %v1081_v13, %v1113_v4  ;;  %v1011_v27 = vadd.f32 %v979_v51, %v1793_v46  ;;  %v1007_v18 = vadd.f32 %v975_v16, %v1809_v9 }
 0x185   : > { %1178 = vst.msk [vmem:[%s1951_s30 + $0x18] sm:$0xff] %vm1174_vm0, %v1145_v58  ;;  %v1047_v19 = vmul.f32 %v1926_v37, %v1011_v27  ;;  %v1043_v30 = vmul.f32 %v1926_v37, %v1007_v18 }
 0x186   : > { %v778_v26 = vpop.permute.xlu1 %777 }
 0x187   : > { %v1083_v54 = vadd.f32 %v1935_v44, %v1047_v19  ;;  %v1079_v3 = vadd.f32 %v1935_v44, %v1043_v30  ;;  %v812_v52 = vmul.f32 %v1743_v48, %v778_v26 }
 0x188   : > { %v879_v7 = vpop.permute.xlu2 %878  ;;  %v871_v47 = vpop.permute.xlu0 %870 }
 0x189   : > { %v1115_v46 = vmul.f32 0.01, %v1083_v54  ;;  %v1111_v6 = vmul.f32 0.01, %v1079_v3  ;;  %v1977_v9 = vadd.f32 %v812_v52, %v1801_v50  ;;  %v982_v22 = vmul.f32 %v1916_v33, %v879_v7 }
 0x18a   : > { %v980_v32 = vmul.f32 %v1916_v33, %v871_v47 }
 0x18b   : > { %v1147_v1 = vmax.f32 %v1083_v54, %v1115_v46  ;;  %v1143_v31 = vmax.f32 %v1079_v3, %v1111_v6  ;;  %v1014_v21 = vadd.f32 %v982_v22, %v1806_v8 }
 0x18c   : > { %v1012_v28 = vadd.f32 %v980_v32, %v1824_v57 }
 0x18d   : > { %1180 = vst.msk [vmem:[%s1951_s30 + $0x28] sm:$0xff] %vm1174_vm0, %v1147_v1  ;;  %v1050_v48 = vmul.f32 %v1926_v37, %v1014_v21 }
 0x18e   : > { %1176 = vst.msk [vmem:[%s1951_s30 + $0x8] sm:$0xff] %vm1174_vm0, %v1143_v31  ;;  %v1048_v2 = vmul.f32 %v1926_v37, %v1012_v28 }
 0x18f   : > { %v1086_v50 = vadd.f32 %v1935_v44, %v1050_v48  ;;  %v855_v45 = vpop.permute.xlu1 %854 }
 0x190   : > { %v1084_v49 = vadd.f32 %v1935_v44, %v1048_v2  ;;  %v976_v53 = vmul.f32 %v1916_v33, %v855_v45  ;;  %v891_v8 = vpop.permute.xlu2 %890  ;;  %v883_v42 = vpop.permute.xlu0 %882 }
 0x191   : > { %v1118_v57 = vmul.f32 0.01, %v1086_v50  ;;  %v985_v13 = vmul.f32 %v1916_v33, %v891_v8  ;;  %v983_v24 = vmul.f32 %v1916_v33, %v883_v42 }
 0x192   : > { %v1116_v61 = vmul.f32 0.01, %v1084_v49  ;;  %v1008_v5 = vadd.f32 %v976_v53, %v1818_v15 }
 0x193   : > { %v1150_v4 = vmax.f32 %v1086_v50, %v1118_v57  ;;  %v1017_v51 = vadd.f32 %v985_v13, %v1821_v55  ;;  %v1015_v16 = vadd.f32 %v983_v24, %v1839_v14 }
 0x194   : > { %v1148_v58 = vmax.f32 %v1084_v49, %v1116_v61  ;;  %v1044_v27 = vmul.f32 %v1926_v37, %v1008_v5 }
 0x195   : > { %1183 = vst.msk [vmem:[%s1951_s30 + $0x40] sm:$0xff] %vm1174_vm0, %v1150_v4  ;;  %v1053_v18 = vmul.f32 %v1926_v37, %v1017_v51  ;;  %v1051_v19 = vmul.f32 %v1926_v37, %v1015_v16 }
 0x196   : > { %1181 = vst.msk [vmem:[%s1951_s30 + $0x30] sm:$0xff] %vm1174_vm0, %v1148_v58  ;;  %v1080_v30 = vadd.f32 %v1935_v44, %v1044_v27 }
 0x197   : > { %v1089_v15 = vadd.f32 %v1935_v44, %v1053_v18  ;;  %v1087_v26 = vadd.f32 %v1935_v44, %v1051_v19  ;;  %v863_v55 = vpop.permute.xlu1 %862 }
 0x198   : > { %v1112_v14 = vmul.f32 0.01, %v1080_v30  ;;  %v978_v54 = vmul.f32 %v1916_v33, %v863_v55  ;;  %v903_v3 = vpop.permute.xlu2 %902  ;;  %v895_v52 = vpop.permute.xlu0 %894 }
 0x199   : > { %v1121_v7 = vmul.f32 0.01, %v1089_v15  ;;  %v1119_v47 = vmul.f32 0.01, %v1087_v26  ;;  %v988_v46 = vmul.f32 %v1916_v33, %v903_v3  ;;  %v986_v6 = vmul.f32 %v1916_v33, %v895_v52 }
 0x19a   : > { %v1144_v22 = vmax.f32 %v1080_v30, %v1112_v14  ;;  %v1010_v32 = vadd.f32 %v978_v54, %v1833_v11 }
 0x19b   : > { %v1153_v1 = vmax.f32 %v1089_v15, %v1121_v7  ;;  %v1151_v31 = vmax.f32 %v1087_v26, %v1119_v47  ;;  %v1020_v21 = vadd.f32 %v988_v46, %v1836_v35  ;;  %v1018_v28 = vadd.f32 %v986_v6, %v1854_v17 }
 0x19c   : > { %1177 = vst.msk [vmem:[%s1951_s30 + $0x10] sm:$0xff] %vm1174_vm0, %v1144_v22  ;;  %v1046_v48 = vmul.f32 %v1926_v37, %v1010_v32 }
 0x19d   : > { %1186 = vst.msk [vmem:[%s1951_s30 + $0x58] sm:$0xff] %vm1174_vm0, %v1153_v1  ;;  %v1056_v2 = vmul.f32 %v1926_v37, %v1020_v21  ;;  %v1054_v50 = vmul.f32 %v1926_v37, %v1018_v28 }
 0x19e   : > { %1184 = vst.msk [vmem:[%s1951_s30 + $0x48] sm:$0xff] %vm1174_vm0, %v1151_v31  ;;  %v1082_v11 = vadd.f32 %v1935_v44, %v1046_v48 }
 0x19f   : > { %v1092_v45 = vadd.f32 %v1935_v44, %v1056_v2  ;;  %v1090_v35 = vadd.f32 %v1935_v44, %v1054_v50  ;;  %v875_v17 = vpop.permute.xlu1 %874 }
 0x1a0   : > { %v1114_v49 = vmul.f32 0.01, %v1082_v11  ;;  %v981_v53 = vmul.f32 %v1916_v33, %v875_v17  ;;  %v915_v8 = vpop.permute.xlu2 %914  ;;  %v907_v42 = vpop.permute.xlu0 %906 }
 0x1a1   : > { %v1124_v57 = vmul.f32 0.01, %v1092_v45  ;;  %v1122_v13 = vmul.f32 0.01, %v1090_v35  ;;  %v991_v24 = vmul.f32 %v1916_v33, %v915_v8  ;;  %v989_v61 = vmul.f32 %v1916_v33, %v907_v42 }
 0x1a2   : > { %v1146_v5 = vmax.f32 %v1082_v11, %v1114_v49  ;;  %v1013_v4 = vadd.f32 %v981_v53, %v1848_v39 }
 0x1a3   : > { %v1156_v51 = vmax.f32 %v1092_v45, %v1124_v57  ;;  %v1154_v16 = vmax.f32 %v1090_v35, %v1122_v13  ;;  %v1023_v58 = vadd.f32 %v991_v24, %v1851_v36  ;;  %v1021_v27 = vadd.f32 %v989_v61, %v1869_v20 }
 0x1a4   : > { %1179 = vst.msk [vmem:[%s1951_s30 + $0x20] sm:$0xff] %vm1174_vm0, %v1146_v5  ;;  %v1049_v18 = vmul.f32 %v1926_v37, %v1013_v4 }
 0x1a5   : > { %1189 = vst.msk [vmem:[%s1951_s30 + $0x70] sm:$0xff] %vm1174_vm0, %v1156_v51  ;;  %v1059_v19 = vmul.f32 %v1926_v37, %v1023_v58  ;;  %v1057_v30 = vmul.f32 %v1926_v37, %v1021_v27 }
 0x1a6   : > { %1187 = vst.msk [vmem:[%s1951_s30 + $0x60] sm:$0xff] %vm1174_vm0, %v1154_v16  ;;  %v1085_v39 = vadd.f32 %v1935_v44, %v1049_v18 }
 0x1a7   : > { %v1095_v15 = vadd.f32 %v1935_v44, %v1059_v19  ;;  %v1093_v36 = vadd.f32 %v1935_v44, %v1057_v30  ;;  %v887_v20 = vpop.permute.xlu1 %886 }
 0x1a8   : > { %v1117_v26 = vmul.f32 0.01, %v1085_v39  ;;  %v984_v55 = vmul.f32 %v1916_v33, %v887_v20  ;;  %v927_v14 = vpop.permute.xlu2 %926  ;;  %v919_v54 = vpop.permute.xlu0 %918 }
 0x1a9   : > { %v1127_v3 = vmul.f32 0.01, %v1095_v15  ;;  %v1125_v52 = vmul.f32 0.01, %v1093_v36  ;;  %v994_v7 = vmul.f32 %v1916_v33, %v927_v14  ;;  %v992_v47 = vmul.f32 %v1916_v33, %v919_v54 }
 0x1aa   : > { %v1149_v46 = vmax.f32 %v1085_v39, %v1117_v26  ;;  %v1016_v6 = vadd.f32 %v984_v55, %v1863_v41 }
 0x1ab   : > { %v1159_v22 = vmax.f32 %v1095_v15, %v1127_v3  ;;  %v1157_v32 = vmax.f32 %v1093_v36, %v1125_v52  ;;  %v1026_v1 = vadd.f32 %v994_v7, %v1866_v0  ;;  %v1024_v31 = vadd.f32 %v992_v47, %v1884_v23 }
 0x1ac   : > { %1182 = vst.msk [vmem:[%s1951_s30 + $0x38] sm:$0xff] %vm1174_vm0, %v1149_v46  ;;  %v1052_v21 = vmul.f32 %v1926_v37, %v1016_v6 }
 0x1ad   : > { %1192 = vst.msk [vmem:[%s1951_s30 + $0x88] sm:$0xff] %vm1174_vm0, %v1159_v22  ;;  %v1062_v28 = vmul.f32 %v1926_v37, %v1026_v1  ;;  %v1060_v48 = vmul.f32 %v1926_v37, %v1024_v31 }
 0x1ae   : > { %1190 = vst.msk [vmem:[%s1951_s30 + $0x78] sm:$0xff] %vm1174_vm0, %v1157_v32  ;;  %v1088_v41 = vadd.f32 %v1935_v44, %v1052_v21 }
 0x1af   : > { %v1098_v2 = vadd.f32 %v1935_v44, %v1062_v28  ;;  %v1096_v0 = vadd.f32 %v1935_v44, %v1060_v48  ;;  %v899_v23 = vpop.permute.xlu1 %898 }
 0x1b0   : > { %v1120_v50 = vmul.f32 0.01, %v1088_v41  ;;  %v987_v11 = vmul.f32 %v1916_v33, %v899_v23  ;;  %v939_v45 = vpop.permute.xlu2 %938  ;;  %v931_v35 = vpop.permute.xlu0 %930 }
 0x1b1   : > { %v1130_v17 = vmul.f32 0.01, %v1098_v2  ;;  %v1128_v49 = vmul.f32 0.01, %v1096_v0  ;;  %v997_v53 = vmul.f32 %v1916_v33, %v939_v45  ;;  %v995_v8 = vmul.f32 %v1916_v33, %v931_v35 }
 0x1b2   : > { %v1152_v42 = vmax.f32 %v1088_v41, %v1120_v50  ;;  %v1019_v57 = vadd.f32 %v987_v11, %v1878_v62 }
 0x1b3   : > { %v1162_v13 = vmax.f32 %v1098_v2, %v1130_v17  ;;  %v1160_v24 = vmax.f32 %v1096_v0, %v1128_v49  ;;  %v1029_v61 = vadd.f32 %v997_v53, %v1881_v38  ;;  %v1027_v5 = vadd.f32 %v995_v8, %v1898_v40 }
 0x1b4   : > { %1185 = vst.msk [vmem:[%s1951_s30 + $0x50] sm:$0xff] %vm1174_vm0, %v1152_v42  ;;  %v1055_v4 = vmul.f32 %v1926_v37, %v1019_v57 }
 0x1b5   : > { %1195 = vst.msk [vmem:[%s1951_s30 + $0xa0] sm:$0xff] %vm1174_vm0, %v1162_v13  ;;  %v1065_v51 = vmul.f32 %v1926_v37, %v1029_v61  ;;  %v1063_v16 = vmul.f32 %v1926_v37, %v1027_v5 }
 0x1b6   : > { %1193 = vst.msk [vmem:[%s1951_s30 + $0x90] sm:$0xff] %vm1174_vm0, %v1160_v24  ;;  %v1091_v62 = vadd.f32 %v1935_v44, %v1055_v4 }
 0x1b7   : > { %v1101_v58 = vadd.f32 %v1935_v44, %v1065_v51  ;;  %v1099_v38 = vadd.f32 %v1935_v44, %v1063_v16  ;;  %v911_v40 = vpop.permute.xlu1 %910 }
 0x1b8   : > { %v1123_v27 = vmul.f32 0.01, %v1091_v62  ;;  %v990_v18 = vmul.f32 %v1916_v33, %v911_v40  ;;  %v951_v19 = vpop.permute.xlu2 %950  ;;  %v943_v30 = vpop.permute.xlu0 %942 }
 0x1b9   : > { %v1133_v39 = vmul.f32 0.01, %v1101_v58  ;;  %v1131_v15 = vmul.f32 0.01, %v1099_v38  ;;  %v1000_v36 = vmul.f32 %v1916_v33, %v951_v19  ;;  %v998_v20 = vmul.f32 %v1916_v33, %v943_v30 }
 0x1ba   : > { %v1155_v26 = vmax.f32 %v1091_v62, %v1123_v27  ;;  %v1022_v55 = vadd.f32 %v990_v18, %v1892_v10 }
 0x1bb   : > { %v1165_v14 = vmax.f32 %v1101_v58, %v1133_v39  ;;  %v1163_v54 = vmax.f32 %v1099_v38, %v1131_v15  ;;  %v1032_v3 = vadd.f32 %v1000_v36, %v1895_v12  ;;  %v1030_v52 = vadd.f32 %v998_v20, %v1912_v56 }
 0x1bc   : > { %1188 = vst.msk [vmem:[%s1951_s30 + $0x68] sm:$0xff] %vm1174_vm0, %v1155_v26  ;;  %v1058_v7 = vmul.f32 %v1926_v37, %v1022_v55 }
 0x1bd   : > { %1198 = vst.msk [vmem:[%s1951_s30 + $0xb8] sm:$0xff] %vm1174_vm0, %v1165_v14  ;;  %v1068_v47 = vmul.f32 %v1926_v37, %v1032_v3  ;;  %v1066_v46 = vmul.f32 %v1926_v37, %v1030_v52 }
 0x1be   : > { %1196 = vst.msk [vmem:[%s1951_s30 + $0xa8] sm:$0xff] %vm1174_vm0, %v1163_v54  ;;  %v1094_v10 = vadd.f32 %v1935_v44, %v1058_v7 }
 0x1bf   : > { %v1104_v6 = vadd.f32 %v1935_v44, %v1068_v47  ;;  %v1102_v12 = vadd.f32 %v1935_v44, %v1066_v46  ;;  %v923_v56 = vpop.permute.xlu1 %922 }
 0x1c0   : > { %v1126_v22 = vmul.f32 0.01, %v1094_v10  ;;  %v993_v32 = vmul.f32 %v1916_v33, %v923_v56  ;;  %v963_v1 = vpop.permute.xlu2 %962  ;;  %v955_v31 = vpop.permute.xlu0 %954 }
 0x1c1   : > { %v1136_v21 = vmul.f32 0.01, %v1104_v6  ;;  %v1134_v28 = vmul.f32 0.01, %v1102_v12  ;;  %v1003_v48 = vmul.f32 %v1916_v33, %v963_v1  ;;  %v1001_v41 = vmul.f32 %v1916_v33, %v955_v31 }
 0x1c2   : > { %v1158_v2 = vmax.f32 %v1094_v10, %v1126_v22  ;;  %v1025_v0 = vadd.f32 %v993_v32, %v1906_v60 }
 0x1c3   : > { %v1168_v23 = vmax.f32 %v1104_v6, %v1136_v21  ;;  %v1166_v50 = vmax.f32 %v1102_v12, %v1134_v28  ;;  %v1035_v11 = vadd.f32 %v1003_v48, %v1909_v59  ;;  %v1033_v45 = vadd.f32 %v1001_v41, %v1930_v43 }
 0x1c4   : > { %1191 = vst.msk [vmem:[%s1951_s30 + $0x80] sm:$0xff] %vm1174_vm0, %v1158_v2  ;;  %v1061_v35 = vmul.f32 %v1926_v37, %v1025_v0 }
 0x1c5   : > { %1201 = vst.msk [vmem:[%s1951_s30 + $0xd0] sm:$0xff] %vm1174_vm0, %v1168_v23  ;;  %v1071_v17 = vmul.f32 %v1926_v37, %v1035_v11  ;;  %v1069_v49 = vmul.f32 %v1926_v37, %v1033_v45 }
 0x1c6   : > { %1199 = vst.msk [vmem:[%s1951_s30 + $0xc0] sm:$0xff] %vm1174_vm0, %v1166_v50  ;;  %v1097_v60 = vadd.f32 %v1935_v44, %v1061_v35 }
 0x1c7   : > { %v1107_v53 = vadd.f32 %v1935_v44, %v1071_v17  ;;  %v1105_v59 = vadd.f32 %v1935_v44, %v1069_v49  ;;  %v935_v43 = vpop.permute.xlu1 %934 }
 0x1c8   : > { %v1129_v8 = vmul.f32 0.01, %v1097_v60  ;;  %v996_v42 = vmul.f32 %v1916_v33, %v935_v43  ;;  %v967_v57 = vpop.permute.xlu0 %966 }
 0x1c9   : > { %v1139_v13 = vmul.f32 0.01, %v1107_v53  ;;  %v1137_v24 = vmul.f32 0.01, %v1105_v59  ;;  %v1004_v61 = vmul.f32 %v1916_v33, %v967_v57 }
 0x1ca   : > { %v1161_v5 = vmax.f32 %v1097_v60, %v1129_v8  ;;  %v1028_v4 = vadd.f32 %v996_v42, %v1921_v29 }
 0x1cb   : > { %v1171_v51 = vmax.f32 %v1107_v53, %v1139_v13  ;;  %v1169_v16 = vmax.f32 %v1105_v59, %v1137_v24  ;;  %v1036_v62 = vadd.f32 %v1004_v61, %v1954_v25 }
 0x1cc   : > { %1194 = vst.msk [vmem:[%s1951_s30 + $0x98] sm:$0xff] %vm1174_vm0, %v1161_v5  ;;  %v1064_v58 = vmul.f32 %v1926_v37, %v1028_v4 }
 0x1cd   : > { %1204 = vst.msk [vmem:[%s1951_s30 + $0xe8] sm:$0xff] %vm1174_vm0, %v1171_v51  ;;  %v1072_v38 = vmul.f32 %v1926_v37, %v1036_v62 }
 0x1ce   : > { %1202 = vst.msk [vmem:[%s1951_s30 + $0xd8] sm:$0xff] %vm1174_vm0, %v1169_v16  ;;  %v1100_v40 = vadd.f32 %v1935_v44, %v1064_v58 }
 0x1cf   : > { %v1108_v29 = vadd.f32 %v1935_v44, %v1072_v38  ;;  %v947_v27 = vpop.permute.xlu1 %946 }
 0x1d0   : > { %v1132_v18 = vmul.f32 0.01, %v1100_v40  ;;  %v999_v25 = vmul.f32 %v1916_v33, %v947_v27 }
 0x1d1   : > { %v1140_v19 = vmul.f32 0.01, %v1108_v29 }
 0x1d2   : > { %v1164_v30 = vmax.f32 %v1100_v40, %v1132_v18  ;;  %v1031_v39 = vadd.f32 %v999_v25, %v1943_v63 }
 0x1d3   : > { %v1172_v15 = vmax.f32 %v1108_v29, %v1140_v19 }
 0x1d4   : > { %1197 = vst.msk [vmem:[%s1951_s30 + $0xb0] sm:$0xff] %vm1174_vm0, %v1164_v30  ;;  %v1067_v36 = vmul.f32 %v1926_v37, %v1031_v39 }
 0x1d5   : > { %1205 = vst.msk [vmem:[%s1951_s30 + $0xf0] sm:$0xff] %vm1174_vm0, %v1172_v15 }
 0x1d6   : > { %v1103_v20 = vadd.f32 %v1935_v44, %v1067_v36 }
 0x1d7   : > { %v959_v26 = vpop.permute.xlu1 %958 }
 0x1d8   : > { %v1135_v55 = vmul.f32 0.01, %v1103_v20  ;;  %v1002_v14 = vmul.f32 %v1916_v33, %v959_v26 }
 0x1da   : > { %v1167_v54 = vmax.f32 %v1103_v20, %v1135_v55  ;;  %v1034_v3 = vadd.f32 %v1002_v14, %v1963_v34 }
 0x1dc   : > { %1200 = vst.msk [vmem:[%s1951_s30 + $0xc8] sm:$0xff] %vm1174_vm0, %v1167_v54  ;;  %v1070_v63 = vmul.f32 %v1926_v37, %v1034_v3 }
 0x1de   : > { %v1106_v52 = vadd.f32 %v1935_v44, %v1070_v63 }
 0x1df   : > { %v971_v7 = vpop.permute.xlu1 %970 }
 0x1e0   : > { %v1138_v47 = vmul.f32 0.01, %v1106_v52  ;;  %v1005_v46 = vmul.f32 %v1916_v33, %v971_v7 }
 0x1e2   : > { %v1170_v10 = vmax.f32 %v1106_v52, %v1138_v47  ;;  %v1037_v6 = vadd.f32 %v1005_v46, %v1977_v9 }
 0x1e4   : > { %1203 = vst.msk [vmem:[%s1951_s30 + $0xe0] sm:$0xff] %vm1174_vm0, %v1170_v10  ;;  %v1073_v12 = vmul.f32 %v1926_v37, %v1037_v6 }
 0x1e6   : > { %v1109_v56 = vadd.f32 %v1935_v44, %v1073_v12 }
 0x1e8   : > { %v1141_v34 = vmul.f32 0.01, %v1109_v56 }
 0x1ea   : > { %v1173_v22 = vmax.f32 %v1109_v56, %v1141_v34 }
 0x1ec   : > { %1206 = vst.msk [vmem:[%s1951_s30 + $0xf8] sm:$0xff] %vm1174_vm0, %v1173_v22 }
 0x1ed PF: > { %s14_s15 = sadd.s32 1, %s1306_s15  }
 0x1ee   : > { %p11_p4 = scmp.ge.s32.totalorder %s14_s15, 4  }
 0x1f0   :  { %13 = sbr.rel (!%p11_p4) target bundleno = 1 (0x1), region = 66 }

// kernel: bottleneck_block_forward.3
= control target key start
LH: loop header
LB: loop body
LE: loop exit
PB: predicated region body
PF: predicated region fallthrough
CT: control target
= control target key end

     0   :  { %s1971_s17 = smov 0   ;;  %s2799_s0 = inlined_call_operand.vmem [shape: f32[2,4,9,9,64], index: 0, kind: input, shape index: {}]   ;;  %s2800_s1 = inlined_call_operand.vmem [shape: f32[2,64,4], index: 1, kind: input, shape index: {}]   ;;  %s2801_s2 = inlined_call_operand.vmem [shape: f32[9,64,64], index: 2, kind: input, shape index: {}]   ;;  %s2802_s3 = inlined_call_operand.vmem [shape: f32[1,64], index: 3, kind: input, shape index: {}]   ;;  %s2803_s4 = inlined_call_operand.vmem [shape: f32[1,64], index: 4, kind: input, shape index: {}]   ;;  %s2804_s5 = inlined_call_operand.vmem [shape: f32[64,128], index: 5, kind: input, shape index: {}]   ;;  %s2805_s6 = inlined_call_operand.vmem [shape: f32[1,128], index: 6, kind: input, shape index: {}]   ;;  %s2806_s7 = inlined_call_operand.vmem [shape: f32[1,128], index: 7, kind: input, shape index: {}]   ;;  %s2807_s8 = inlined_call_operand.vmem [shape: f32[4,128], index: 8, kind: input, shape index: {}]   ;;  %s2808_s9 = inlined_call_operand.vmem [shape: f32[1,128], index: 9, kind: input, shape index: {}]   ;;  %s2809_s10 = inlined_call_operand.vmem [shape: f32[1,128], index: 10, kind: input, shape index: {}]   ;;  %s2810_s11 = inlined_call_operand.vmem [shape: f32[2,64,128], index: 11, kind: output, shape index: {}]  }
   0x1 LB: > { %s1661_s18 = sadd.s32 4294967295, %s1905_s17   ;;  %p1665_p0 = scmp.ge.s32.totalorder %s1905_s17, 1  ;;  %s1905_s17 = sphi %s1971_s17, %s21_s17  }
   0x2   : > { %p347_p1 = scmp.lt.s32.totalorder %s1905_s17, 3 }
   0x4   : > { %p348_p2 = pnand %p1665_p0, %p347_p1 }
   0x5   : > { %p392_p3 = scmp.lt.s32.totalorder (!%p348_p2), %s1661_s18, 1 }
   0x6   : > { %351 = sbr.rel (%p348_p2) target bundleno = 462 (0x1ce), region = 64 }
   0xb   : > { %v1711_v0 = vld [vmem:[%s2801_s2 + $0x78] sm:$0xff]  ;;  %v1710_v2 = vld [vmem:[%s2801_s2 + $0x70] sm:$0xff]  ;;  %v1709_v4 = vld [vmem:[%s2801_s2 + $0x68] sm:$0xff]  ;;  %s2812_s18 = smov (!%p392_p3, %s1661_s18), 1  ;;  %vm478_vm0 = vcmask 523264   ;;  %vm617_vm1 = vcmask 1046528  }
   0xc   : > { %v468_v1 = vld [vmem:[%s2801_s2 + $0x38] sm:$0xff]  ;;  %1852 = vmatpush.msra.mxu2 %v1711_v0  ;;  %v467_v3 = vld [vmem:[%s2801_s2 + $0x30] sm:$0xff]  ;;  %v466_v5 = vld [vmem:[%s2801_s2 + $0x28] sm:$0xff]  ;;  %511 = vmatpush.msra.mxu0 %v1711_v0  ;;  %s1868_s22 = smul.u32 576, %s2812_s18  ;;  %s1850_s21 = sshll.u32 %s2812_s18, 6 }
   0xd   : > { %1860 = vmatpush.msra.mxu3 %v468_v1  ;;  %576 = vmatpush.msra.mxu1 %v468_v1  ;;  %v1708_v6 = vld [vmem:[%s2801_s2 + $0x60] sm:$0xff]  ;;  %v1707_v8 = vld [vmem:[%s2801_s2 + $0x58] sm:$0xff]  ;;  %v1706_v10 = vld [vmem:[%s2801_s2 + $0x50] sm:$0xff]  ;;  %s2388_s24 = scalar_lea.vmem %s2800_s1, %s1850_s21  ;;  %s2738_s25 = scalar_lea.vmem %s2810_s11, %s1850_s21 }
   0xe   : > { %1853 = vmatpush.msra.mxu2 %v1710_v2  ;;  %v465_v7 = vld [vmem:[%s2801_s2 + $0x20] sm:$0xff]  ;;  %512 = vmatpush.msra.mxu0 %v1710_v2  ;;  %v464_v9 = vld [vmem:[%s2801_s2 + $0x18] sm:$0xff]  ;;  %v463_v11 = vld [vmem:[%s2801_s2 + $0x10] sm:$0xff]  ;;  %s2027_s14 = scalar_lea.vmem %s2799_s0, %s1868_s22 }
   0xf   : > { %1861 = vmatpush.msra.mxu3 %v467_v3  ;;  %577 = vmatpush.msra.mxu1 %v467_v3  ;;  %v1705_v12 = vld [vmem:[%s2801_s2 + $0x48] sm:$0xff]  ;;  %v1704_v14 = vld [vmem:[%s2801_s2 + $0x40] sm:$0xff]  ;;  %v2036_v16 = vld [vmem:[%s2027_s14 + $0xd0] sm:$0xff] }
  0x10   : > { %1854 = vmatpush.msra.mxu2 %v1709_v4  ;;  %513 = vmatpush.msra.mxu0 %v1709_v4  ;;  %v462_v13 = vld [vmem:[%s2801_s2 + $0x8] sm:$0xff]  ;;  %v461_v15 = vld [vmem:[%s2801_s2] sm:$0xff]  ;;  %v1735_v18 = vld [vmem:[%s2801_s2 + $0xb8] sm:$0xff] }
  0x11   : > { %1862 = vmatpush.msra.mxu3 %v466_v5  ;;  %578 = vmatpush.msra.mxu1 %v466_v5  ;;  %v2039_v17 = vld [vmem:[%s2027_s14 + $0x40] sm:$0xff]  ;;  %v1751_v19 = vld [vmem:[%s2801_s2 + $0xf8] sm:$0xff]  ;;  %v1734_v20 = vld [vmem:[%s2801_s2 + $0xb0] sm:$0xff] }
  0x12   : > { %1855 = vmatpush.msra.mxu2 %v1708_v6  ;;  %514 = vmatpush.msra.mxu0 %v1708_v6  ;;  %v1750_v21 = vld [vmem:[%s2801_s2 + $0xf0] sm:$0xff]  ;;  %v2059_v23 = vld [vmem:[%s2027_s14] sm:$0xff]  ;;  %v1733_v24 = vld [vmem:[%s2801_s2 + $0xa8] sm:$0xff] }
  0x13   : > { %1863 = vmatpush.msra.mxu3 %v465_v7  ;;  %579 = vmatpush.msra.mxu1 %v465_v7  ;;  %v1671_v22 = vld [vmem:[%s2027_s14 + $0x90] sm:$0xff]  ;;  %v1749_v25 = vld [vmem:[%s2801_s2 + $0xe8] sm:$0xff]  ;;  %v1767_v26 = vld [vmem:[%s2801_s2 + $0x138] sm:$0xff]  ;;  %v618_v7 = vrot.slane %v2059_v23, 1 }
  0x14   : > { %1856 = vmatpush.msra.mxu2 %v1707_v8  ;;  %515 = vmatpush.msra.mxu0 %v1707_v8  ;;  %v1783_v27 = vld [vmem:[%s2801_s2 + $0x178] sm:$0xff]  ;;  %v2074_v28 = vld [vmem:[%s2027_s14 + $0xe0] sm:$0xff]  ;;  %v2086_v31 = vld [vmem:[%s2027_s14 + $0x50] sm:$0xff] }
  0x15   : > { %1864 = vmatpush.msra.mxu3 %v464_v9  ;;  %580 = vmatpush.msra.mxu1 %v464_v9  ;;  %v1732_v29 = vld [vmem:[%s2801_s2 + $0xa0] sm:$0xff]  ;;  %v1766_v32 = vld [vmem:[%s2801_s2 + $0x130] sm:$0xff]  ;;  %v1731_v33 = vld [vmem:[%s2801_s2 + $0x98] sm:$0xff] }
  0x16   : > { %1857 = vmatpush.msra.mxu2 %v1706_v10  ;;  %516 = vmatpush.msra.mxu0 %v1706_v10  ;;  %v1748_v30 = vld [vmem:[%s2801_s2 + $0xe0] sm:$0xff]  ;;  %v1747_v34 = vld [vmem:[%s2801_s2 + $0xd8] sm:$0xff]  ;;  %v1782_v35 = vld [vmem:[%s2801_s2 + $0x170] sm:$0xff] }
  0x17   : > { %1865 = vmatpush.msra.mxu3 %v463_v11  ;;  %581 = vmatpush.msra.mxu1 %v463_v11  ;;  %v1765_v36 = vld [vmem:[%s2801_s2 + $0x128] sm:$0xff]  ;;  %v1730_v37 = vld [vmem:[%s2801_s2 + $0x90] sm:$0xff]  ;;  %v2111_v38 = vld [vmem:[%s2027_s14 + $0xa0] sm:$0xff] }
  0x18   : > { %1858 = vmatpush.msra.mxu2 %v1705_v12  ;;  %517 = vmatpush.msra.mxu0 %v1705_v12  ;;  %v2114_v39 = vld [vmem:[%s2027_s14 + $0x10] sm:$0xff]  ;;  %v1764_v41 = vld [vmem:[%s2801_s2 + $0x120] sm:$0xff]  ;;  %v1729_v42 = vld [vmem:[%s2801_s2 + $0x88] sm:$0xff] }
  0x19   : > { %1866 = vmatpush.msra.mxu3 %v462_v13  ;;  %582 = vmatpush.msra.mxu1 %v462_v13  ;;  %v1746_v40 = vld [vmem:[%s2801_s2 + $0xd0] sm:$0xff]  ;;  %v1781_v43 = vld [vmem:[%s2801_s2 + $0x168] sm:$0xff]  ;;  %v1763_v45 = vld [vmem:[%s2801_s2 + $0x118] sm:$0xff] }
  0x1a   : > { %1859 = vmatpush.msra.mxu2 %v1704_v14  ;;  %518 = vmatpush.msra.mxu0 %v1704_v14  ;;  %v1745_v44 = vld [vmem:[%s2801_s2 + $0xc8] sm:$0xff]  ;;  %v2139_v46 = vld [vmem:[%s2027_s14 + $0xf0] sm:$0xff]  ;;  %v2142_v47 = vld [vmem:[%s2027_s14 + $0x60] sm:$0xff] }
  0x1b   : > { %1867 = vmatpush.msra.mxu3 %v461_v15  ;;  %1716 = vmatmul.msk.f32.vlgmr.msra.gmra.mxu2 %vm478_vm0, %v2036_v16  ;;  %v1728_v48 = vld [vmem:[%s2801_s2 + $0x80] sm:$0xff]  ;;  %v1762_v50 = vld [vmem:[%s2801_s2 + $0x110] sm:$0xff]  ;;  %v1799_v51 = vld [vmem:[%s2801_s2 + $0x1b8] sm:$0xff] }
  0x1c   : > { %1724 = vmatmul.msk.f32.vlgmr.msra.gmra.mxu3 %vm478_vm0, %v2039_v17  ;;  %675 = vmatpush.msrb.mxu2 %v1735_v18  ;;  %v1744_v49 = vld [vmem:[%s2801_s2 + $0xc0] sm:$0xff]  ;;  %v1815_v52 = vld [vmem:[%s2801_s2 + $0x1f8] sm:$0xff]  ;;  %v2167_v54 = vld [vmem:[%s2027_s14 + $0xb0] sm:$0xff] }
  0x1d   : > { %757 = vmatpush.msrb.mxu3 %v1751_v19  ;;  %583 = vmatpush.msra.mxu1 %v461_v15  ;;  %v1780_v53 = vld [vmem:[%s2801_s2 + $0x160] sm:$0xff]  ;;  %v1761_v56 = vld [vmem:[%s2801_s2 + $0x108] sm:$0xff]  ;;  %v1779_v57 = vld [vmem:[%s2801_s2 + $0x158] sm:$0xff] }
  0x1e   : > { %676 = vmatpush.msrb.mxu2 %v1734_v20  ;;  %1712 = vmatmul.msk.f32.vlgmr.msra.gmra.mxu0 %vm478_vm0, %v1671_v22  ;;  %v2170_v55 = vld [vmem:[%s2027_s14 + $0x20] sm:$0xff]  ;;  %v1798_v58 = vld [vmem:[%s2801_s2 + $0x1b0] sm:$0xff]  ;;  %v408_v0 = vld [vmem:[%s2027_s14 + $0x8] sm:$0x1] }
  0x1f   : > { %758 = vmatpush.msrb.mxu3 %v1750_v21  ;;  %1720 = vmatmul.msk.f32.vlgmr.msra.gmra.mxu1 %vm478_vm0, %v2059_v23  ;;  %v1814_v59 = vld [vmem:[%s2801_s2 + $0x1f0] sm:$0xff]  ;;  %v1760_v60 = vld [vmem:[%s2801_s2 + $0x100] sm:$0xff]  ;;  %v1777_v1 = vld [vmem:[%s2801_s2 + $0x148] sm:$0xff]  ;;  %v619_v8 = vrot.slane %v408_v0, 1  ;;  %v621_v23 = vrot.slane %v2114_v39, 1 }
  0x20   : > { %677 = vmatpush.msrb.mxu2 %v1733_v24  ;;  %839 = vmatpush.msrb.mxu0 %v1767_v26  ;;  %v1778_v61 = vld [vmem:[%s2801_s2 + $0x150] sm:$0xff]  ;;  %v2195_v62 = vld [vmem:[%s2027_s14 + $0x100] sm:$0xff]  ;;  %v1831_v2 = vld [vmem:[%s2801_s2 + $0x238] sm:$0xff] }
  0x21   : > { %759 = vmatpush.msrb.mxu3 %v1749_v25  ;;  %945 = vmatpush.msrb.mxu1 %v1783_v27  ;;  %v2198_v63 = vld [vmem:[%s2027_s14 + $0x70] sm:$0xff]  ;;  %v1797_v3 = vld [vmem:[%s2801_s2 + $0x1a8] sm:$0xff]  ;;  %v1776_v5 = vld [vmem:[%s2801_s2 + $0x140] sm:$0xff]  ;;  %v620_v18 = vsel %vm617_vm1, %v618_v7, %v619_v8  ;;  %v630_v8 = vrot.slane %v2039_v17, 1 }
  0x22   : > { %678 = vmatpush.msrb.mxu2 %v1732_v29  ;;  %840 = vmatpush.msrb.mxu0 %v1766_v32  ;;  %v1813_v4 = vld [vmem:[%s2801_s2 + $0x1e8] sm:$0xff]  ;;  %v1830_v6 = vld [vmem:[%s2801_s2 + $0x230] sm:$0xff]  ;;  %v2225_v9 = vld [vmem:[%s2027_s14 + $0xc0] sm:$0xff] }
  0x23   : > { %760 = vmatpush.msrb.mxu3 %v1748_v30  ;;  %1717 = vmatmul.msk.f32.gmra.mxu2 %vm478_vm0, %v2074_v28  ;;  %v2228_v10 = vld [vmem:[%s2027_s14 + $0x30] sm:$0xff]  ;;  %v1681_v11 = vld [vmem:[%s2027_s14 + $0x128] sm:$0x1]  ;;  %v1796_v12 = vld [vmem:[%s2801_s2 + $0x1a0] sm:$0xff] }
  0x24   : > { %1725 = vmatmul.msk.f32.gmra.mxu3 %vm478_vm0, %v2086_v31  ;;  %679 = vmatpush.msrb.mxu2 %v1731_v33  ;;  %v1812_v13 = vld [vmem:[%s2801_s2 + $0x1e0] sm:$0xff]  ;;  %v1829_v14 = vld [vmem:[%s2801_s2 + $0x228] sm:$0xff]  ;;  %v889_v20 = vrot.slane %v1681_v11, 1  ;;  %v410_v21 = vld [vmem:[%s2027_s14 + $0x18] sm:$0x1] }
  0x25   : > { %761 = vmatpush.msrb.mxu3 %v1747_v34  ;;  %946 = vmatpush.msrb.mxu1 %v1782_v35  ;;  %v1680_v15 = vld [vmem:[%s2027_s14 + $0x120] sm:$0xff]  ;;  %v1795_v22 = vld [vmem:[%s2801_s2 + $0x198] sm:$0xff]  ;;  %v622_v24 = vrot.slane %v410_v21, 1  ;;  %v1696_v25 = vld [vmem:[%s2027_s14 + $0x1b0] sm:$0xff] }
  0x26   : > { %841 = vmatpush.msrb.mxu0 %v1765_v36  ;;  %680 = vmatpush.msrb.mxu2 %v1730_v37  ;;  %v888_v19 = vrot.slane %v1680_v15, 1  ;;  %v1811_v27 = vld [vmem:[%s2801_s2 + $0x1d8] sm:$0xff]  ;;  %v1828_v29 = vld [vmem:[%s2801_s2 + $0x220] sm:$0xff]  ;;  %v1682_v32 = vld [vmem:[%s2027_s14 + $0x130] sm:$0xff] }
  0x27   : > { %1713 = vmatmul.msk.f32.gmra.mxu0 %vm478_vm0, %v2111_v38  ;;  %1721 = vmatmul.msk.f32.gmra.mxu1 %vm478_vm0, %v2114_v39  ;;  %v1683_v30 = vld [vmem:[%s2027_s14 + $0x138] sm:$0x1]  ;;  %v2266_v33 = vsel %vm617_vm1, %v621_v23, %v622_v24  ;;  %v891_v34 = vrot.slane %v1682_v32, 1  ;;  %v412_v36 = vld [vmem:[%s2027_s14 + $0x28] sm:$0x1]  ;;  %v1794_v37 = vld [vmem:[%s2801_s2 + $0x190] sm:$0xff] }
  0x28   : > { %762 = vmatpush.msrb.mxu3 %v1746_v40  ;;  %842 = vmatpush.msrb.mxu0 %v1764_v41  ;;  %v890_v26 = vsel %vm617_vm1, %v888_v19, %v889_v20  ;;  %v892_v35 = vrot.slane %v1683_v30, 1  ;;  %v624_v40 = vrot.slane %v2170_v55, 1  ;;  %v625_v41 = vrot.slane %v412_v36, 1  ;;  %v1826_v0 = vld [vmem:[%s2801_s2 + $0x210] sm:$0xff]  ;;  %v1792_v7 = vld [vmem:[%s2801_s2 + $0x180] sm:$0xff] }
  0x29   : > { %681 = vmatpush.msrb.mxu2 %v1729_v42  ;;  %947 = vmatpush.msrb.mxu1 %v1781_v43  ;;  %v1697_v42 = vld [vmem:[%s2027_s14 + $0x1c0] sm:$0xff]  ;;  %v418_v23 = vld [vmem:[%s2027_s14 + $0x58] sm:$0x1] }
  0x2a   : > { %763 = vmatpush.msrb.mxu3 %v1745_v44  ;;  %843 = vmatpush.msrb.mxu0 %v1763_v45  ;;  %v893_v43 = vsel %vm617_vm1, %v891_v34, %v892_v35  ;;  %v1810_v44 = vld [vmem:[%s2801_s2 + $0x1d0] sm:$0xff]  ;;  %v1827_v45 = vld [vmem:[%s2801_s2 + $0x218] sm:$0xff]  ;;  %v1688_v19 = vld [vmem:[%s2027_s14 + $0x160] sm:$0xff] }
  0x2b   : > { %1718 = vmatmul.msk.f32.gmra.mxu2 %vm478_vm0, %v2139_v46  ;;  %948 = vmatpush.msrb.mxu1 %v1780_v53  ;;  %v414_v53 = vld [vmem:[%s2027_s14 + $0x38] sm:$0x1]  ;;  %v900_v21 = vrot.slane %v1688_v19, 1  ;;  %v1824_v24 = vld [vmem:[%s2801_s2 + $0x200] sm:$0xff] }
  0x2c   : > { %1726 = vmatmul.msk.f32.gmra.mxu3 %vm478_vm0, %v2142_v47  ;;  %682 = vmatpush.msrb.mxu2 %v1728_v48  ;;  %v1685_v48 = vld [vmem:[%s2027_s14 + $0x148] sm:$0x1]  ;;  %v1691_v30 = vld [vmem:[%s2027_s14 + $0x178] sm:$0x1] }
  0x2d   : > { %764 = vmatpush.msrb.mxu3 %v1744_v49  ;;  %844 = vmatpush.msrb.mxu0 %v1762_v50  ;;  %v1684_v49 = vld [vmem:[%s2027_s14 + $0x140] sm:$0xff]  ;;  %v2289_v50 = vsel %vm617_vm1, %v624_v40, %v625_v41  ;;  %v904_v36 = vrot.slane %v1691_v30, 1  ;;  %v636_v40 = vrot.slane %v2142_v47, 1 }
  0x2e   : > { %1006 = vmatpush.msra.mxu2 %v1799_v51  ;;  %949 = vmatpush.msrb.mxu1 %v1779_v57  ;;  %v894_v51 = vrot.slane %v1684_v49, 1  ;;  %v627_v57 = vrot.slane %v2228_v10, 1 }
  0x2f   : > { %1067 = vmatpush.msra.mxu3 %v1815_v52  ;;  %1714 = vmatmul.msk.f32.gmra.mxu0 %vm478_vm0, %v2167_v54  ;;  %v895_v52 = vrot.slane %v1685_v48, 1 }
  0x30   : > { %1722 = vmatmul.msk.f32.gmra.mxu1 %vm478_vm0, %v2170_v55  ;;  %845 = vmatpush.msrb.mxu0 %v1761_v56  ;;  %v1793_v56 = vld [vmem:[%s2801_s2 + $0x188] sm:$0xff] }
  0x31   : > { %1007 = vmatpush.msra.mxu2 %v1798_v58  ;;  %1068 = vmatpush.msra.mxu3 %v1814_v59  ;;  %v628_v58 = vrot.slane %v414_v53, 1  ;;  %v1698_v59 = vld [vmem:[%s2027_s14 + $0x1d0] sm:$0xff]  ;;  %v639_v53 = vrot.slane %v2198_v63, 1 }
  0x32   : > { %846 = vmatpush.msrb.mxu0 %v1760_v60  ;;  %950 = vmatpush.msrb.mxu1 %v1778_v61  ;;  %v896_v60 = vsel %vm617_vm1, %v894_v51, %v895_v52  ;;  %v1809_v61 = vld [vmem:[%s2801_s2 + $0x1c8] sm:$0xff]  ;;  %v422_v52 = vld [vmem:[%s2027_s14 + $0x78] sm:$0x1] }
  0x33   : > { %1719 = vmatmul.msk.f32.gmra.mxu2 %vm478_vm0, %v2195_v62  ;;  %1069 = vmatpush.msra.mxu3 %v1813_v4 }
  0x34   : > { %1727 = vmatmul.msk.f32.gmra.mxu3 %vm478_vm0, %v2198_v63  ;;  %951 = vmatpush.msrb.mxu1 %v1777_v1  ;;  %v1687_v1 = vld [vmem:[%s2027_s14 + $0x158] sm:$0x1] }
  0x35   : > { %1131 = vmatpush.msra.mxu0 %v1831_v2  ;;  %1008 = vmatpush.msra.mxu2 %v1797_v3  ;;  %v1686_v2 = vld [vmem:[%s2027_s14 + $0x150] sm:$0xff]  ;;  %v2312_v3 = vsel %vm617_vm1, %v627_v57, %v628_v58 }
  0x36   : > { %952 = vmatpush.msrb.mxu1 %v1776_v5  ;;  %1070 = vmatpush.msra.mxu3 %v1812_v13  ;;  %v897_v4 = vrot.slane %v1686_v2, 1  ;;  %v898_v5 = vrot.slane %v1687_v1, 1  ;;  %v1702_v57 = vld [vmem:[%s2027_s14 + $0x210] sm:$0xff] }
  0x37   : > { %1132 = vmatpush.msra.mxu0 %v1830_v6  ;;  %1009 = vmatpush.msra.mxu2 %v1796_v12  ;;  %v416_v6 = vld [vmem:[%s2027_s14 + $0x48] sm:$0x1]  ;;  %v1699_v12 = vld [vmem:[%s2027_s14 + $0x1e0] sm:$0xff] }
  0x38   : > { %1715 = vmatmul.msk.f32.gmra.mxu0 %vm478_vm0, %v2225_v9  ;;  %1723 = vmatmul.msk.f32.gmra.mxu1 %vm478_vm0, %v2228_v10  ;;  %v631_v11 = vrot.slane %v416_v6, 1  ;;  %v899_v13 = vsel %vm617_vm1, %v897_v4, %v898_v5  ;;  %v1703_v4 = vld [vmem:[%s2027_s14 + $0x220] sm:$0xff]  ;;  %v1907_v6 = vmov 0  }
  0x39   : > { %1133 = vmatpush.msra.mxu0 %v1829_v14  ;;  %1010 = vmatpush.msra.mxu2 %v1795_v22  ;;  %v1808_v14 = vld [vmem:[%s2801_s2 + $0x1c0] sm:$0xff] }
  0x3a   : > { %1071 = vmatpush.msra.mxu3 %v1811_v27  ;;  %v2335_v20 = vsel %vm617_vm1, %v630_v8, %v631_v11  ;;  %v1700_v27 = vld [vmem:[%s2027_s14 + $0x1f0] sm:$0xff]  ;;  %1882 = vset.pattern.permute.xlu1 %v1907_v6  ;;  %v424_v8 = vld [vmem:[%s2027_s14 + $0x88] sm:$0x1]  ;;  %v1219_v11 = vld [vmem:[%s2804_s5 + $0x38] sm:$0xff] }
  0x3b   : > { %1736 = vmatmul.msk.f32.vlgmr.msrb.gmra.mxu2 %vm478_vm0, %v620_v18  ;;  %1134 = vmatpush.msra.mxu0 %v1828_v29  ;;  %v1689_v18 = vld [vmem:[%s2027_s14 + $0x168] sm:$0x1] }
  0x3c   : > { %1752 = vmatmul.msk.f32.vlgmr.msrb.gmra.mxu3 %vm478_vm0, %v1680_v15  ;;  %1011 = vmatpush.msra.mxu2 %v1794_v37  ;;  %v1825_v15 = vld [vmem:[%s2801_s2 + $0x208] sm:$0xff]  ;;  %v901_v22 = vrot.slane %v1689_v18, 1 }
  0x3d   : > { %1072 = vmatpush.msra.mxu3 %v1810_v44  ;;  %1135 = vmatpush.msra.mxu0 %v1827_v45  ;;  %v420_v37 = vld [vmem:[%s2027_s14 + $0x68] sm:$0x1]  ;;  %v1692_v45 = vld [vmem:[%s2027_s14 + $0x180] sm:$0xff] }
  0x3e   : > { %1012 = vmatpush.msra.mxu2 %v1793_v56  ;;  %v902_v29 = vsel %vm617_vm1, %v900_v21, %v901_v22  ;;  %v637_v41 = vrot.slane %v420_v37, 1  ;;  %v1693_v44 = vld [vmem:[%s2027_s14 + $0x188] sm:$0x1]  ;;  %v640_v56 = vrot.slane %v422_v52, 1  ;;  %1883 = vset.pattern.permute.xlu2 %v1907_v6  ;;  %v1218_v22 = vld [vmem:[%s2804_s5 + $0x30] sm:$0xff]  ;;  %v1216_v37 = vld [vmem:[%s2804_s5 + $0x20] sm:$0xff] }
  0x3f   : > { %1073 = vmatpush.msra.mxu3 %v1809_v61  ;;  %1136 = vmatpush.msra.mxu0 %v1826_v0  ;;  %v907_v51 = vrot.slane %v1693_v44, 1 }
  0x40   : > { %1768 = vmatmul.msk.f32.vlgmr.msrb.gmra.mxu0 %vm478_vm0, %v1696_v25  ;;  %1784 = vmatmul.msk.f32.vlgmr.msrb.gmra.mxu1 %vm478_vm0, %v890_v26  ;;  %v633_v25 = vrot.slane %v2086_v31, 1  ;;  %v634_v26 = vrot.slane %v418_v23, 1  ;;  %v2366_v48 = vsel %vm617_vm1, %v636_v40, %v637_v41  ;;  %v2381_v61 = vsel %vm617_vm1, %v639_v53, %v640_v56 }
  0x41   : > { %1013 = vmatpush.msra.mxu2 %v1792_v7  ;;  %1074 = vmatpush.msra.mxu3 %v1808_v14  ;;  %v2408_v7 = vld [vmem:[%s2388_s24 + $0x18] sm:$0xff] }
  0x42   : > { %1137 = vmatpush.msra.mxu0 %v1825_v15  ;;  %v2352_v34 = vsel %vm617_vm1, %v633_v25, %v634_v26  ;;  %1881 = vset.pattern.permute.xlu0 %v1907_v6  ;;  %v423_v15 = vld [vmem:[%s2027_s14 + $0x80] sm:$0xff]  ;;  %v1331_v26 = vld [vmem:[%s2388_s24 + $0x30] sm:$0xff] }
  0x43   : > { %1737 = vmatmul.msk.f32.gmra.mxu2 %vm478_vm0, %v2266_v33  ;;  %1252 = vmatpush.msra.mxu1 %v1219_v11  ;;  %v1109_v18 = vrot.slane %v423_v15, 1 }
  0x44   : > { %1753 = vmatmul.msk.f32.gmra.mxu3 %vm478_vm0, %v1682_v32  ;;  %1138 = vmatpush.msra.mxu0 %v1824_v24  ;;  %v1690_v32 = vld [vmem:[%s2027_s14 + $0x170] sm:$0xff] }
  0x45   : > { %v903_v35 = vrot.slane %v1690_v32, 1  ;;  %1253 = vmatpush.msra.mxu1 %v1218_v22 }
  0x48   : > { %1769 = vmatmul.msk.f32.gmra.mxu0 %vm478_vm0, %v1697_v42  ;;  %1785 = vmatmul.msk.f32.gmra.mxu1 %vm478_vm0, %v893_v43  ;;  %v1701_v42 = vld [vmem:[%s2027_s14 + $0x200] sm:$0xff]  ;;  %v905_v43 = vsel %vm617_vm1, %v903_v35, %v904_v36 }
  0x4b   : > { %1738 = vmatmul.msk.f32.gmra.mxu2 %vm478_vm0, %v2289_v50 }
  0x4c   : > { %1754 = vmatmul.msk.f32.gmra.mxu3 %vm478_vm0, %v1684_v49  ;;  %v906_v49 = vrot.slane %v1692_v45, 1 }
  0x4e   : > { %v908_v58 = vsel %vm617_vm1, %v906_v49, %v907_v51  ;;  %v1214_v51 = vld [vmem:[%s2804_s5 + $0x10] sm:$0xff] }
  0x50   : > { %1770 = vmatmul.msk.f32.gmra.mxu0 %vm478_vm0, %v1698_v59  ;;  %1786 = vmatmul.msk.f32.gmra.mxu1 %vm478_vm0, %v896_v60  ;;  %v1695_v59 = vld [vmem:[%s2027_s14 + $0x198] sm:$0x1]  ;;  %v1694_v60 = vld [vmem:[%s2027_s14 + $0x190] sm:$0xff] }
  0x51   : > { %v909_v0 = vrot.slane %v1694_v60, 1  ;;  %v910_v1 = vrot.slane %v1695_v59, 1 }
  0x53   : > { %1739 = vmatmul.msk.f32.gmra.mxu2 %vm478_vm0, %v2312_v3  ;;  %v911_v5 = vsel %vm617_vm1, %v909_v0, %v910_v1 }
  0x54   : > { %1755 = vmatmul.msk.f32.gmra.mxu3 %vm478_vm0, %v1686_v2  ;;  %v2394_v2 = vld [vmem:[%s2388_s24 + $0x10] sm:$0xff] }
  0x55   : > { %1346 = vperm.xlu1 %1882, %v2394_v2  }
  0x58   : > { %1771 = vmatmul.msk.f32.gmra.mxu0 %vm478_vm0, %v1699_v12  ;;  %1787 = vmatmul.msk.f32.gmra.mxu1 %vm478_vm0, %v899_v13 }
  0x5b   : > { %1740 = vmatmul.msk.f32.gmra.mxu2 %vm478_vm0, %v2335_v20 }
  0x5c   : > { %1756 = vmatmul.msk.f32.gmra.mxu3 %vm478_vm0, %v1688_v19  ;;  %v1110_v19 = vrot.slane %v424_v8, 1 }
  0x5d   : > { %1351 = vperm.xlu1 %1882, %v2408_v7  }
  0x5e   : > { %v1111_v21 = vsel %vm617_vm1, %v1109_v18, %v1110_v19 }
  0x60   : > { %1772 = vmatmul.msk.f32.gmra.mxu0 %vm478_vm0, %v1700_v27  ;;  %1788 = vmatmul.msk.f32.gmra.mxu1 %vm478_vm0, %v902_v29  ;;  %v1217_v29 = vld [vmem:[%s2804_s5 + $0x28] sm:$0xff] }
  0x61   : > { %1254 = vmatpush.msra.mxu1 %v1217_v29 }
  0x63   : > { %1741 = vmatmul.msk.f32.gmra.mxu2 %vm478_vm0, %v2352_v34  ;;  %1255 = vmatpush.msra.mxu1 %v1216_v37 }
  0x64   : > { %1757 = vmatmul.msk.f32.gmra.mxu3 %vm478_vm0, %v1690_v32 }
  0x68   : > { %1773 = vmatmul.msk.f32.gmra.mxu0 %vm478_vm0, %v1701_v42  ;;  %1789 = vmatmul.msk.f32.gmra.mxu1 %vm478_vm0, %v905_v43  ;;  %v1215_v43 = vld [vmem:[%s2804_s5 + $0x18] sm:$0xff] }
  0x69   : > { %1256 = vmatpush.msra.mxu1 %v1215_v43 }
  0x6b   : > { %1742 = vmatmul.msk.f32.gmra.mxu2 %vm478_vm0, %v2366_v48  ;;  %1257 = vmatpush.msra.mxu1 %v1214_v51 }
  0x6c   : > { %1758 = vmatmul.msk.f32.gmra.mxu3 %vm478_vm0, %v1692_v45 }
  0x70   : > { %1774 = vmatmul.msk.f32.gmra.mxu0 %vm478_vm0, %v1702_v57  ;;  %1790 = vmatmul.msk.f32.gmra.mxu1 %vm478_vm0, %v908_v58  ;;  %v1213_v58 = vld [vmem:[%s2804_s5 + $0x8] sm:$0xff] }
  0x71   : > { %1258 = vmatpush.msra.mxu1 %v1213_v58 }
  0x73   : > { %1743 = vmatmul.msk.f32.gmra.mxu2 %vm478_vm0, %v2381_v61 }
  0x74   : > { %1759 = vmatmul.msk.f32.gmra.mxu3 %vm478_vm0, %v1694_v60 }
  0x78   : > { %1775 = vmatmul.msk.f32.gmra.mxu0 %vm478_vm0, %v1703_v4  ;;  %1791 = vmatmul.msk.f32.gmra.mxu1 %vm478_vm0, %v911_v5  ;;  %v1212_v5 = vld [vmem:[%s2804_s5] sm:$0xff] }
  0x79   : > { %1259 = vmatpush.msra.mxu1 %v1212_v5 }
  0x7b   : > { %1800 = vmatmul.msk.f32.vlgmr.msra.gmra.mxu2 %vm478_vm0, %v2114_v39  ;;  %v2418_v39 = vld [vmem:[%s2388_s24 + $0x38] sm:$0xff] }
  0x7c   : > { %1816 = vmatmul.msk.f32.vlgmr.msra.gmra.mxu3 %vm478_vm0, %v2111_v38  ;;  %1371 = vperm.xlu1 %1882, %v2418_v39   ;;  %v1908_v38 = vmov 1  }
  0x80   : > { %1832 = vmatmul.msk.f32.vlgmr.msra.gmra.mxu0 %vm478_vm0, %v2266_v33 }
  0x83   : > { %1801 = vmatmul.msk.f32.gmra.mxu2 %vm478_vm0, %v2170_v55 }
  0x84   : > { %1817 = vmatmul.msk.f32.gmra.mxu3 %vm478_vm0, %v2167_v54  ;;  %1886 = vset.pattern.permute.xlu1 %v1908_v38  ;;  %v2436_v54 = vld [vmem:[%s2388_s24 + $0x20] sm:$0xff] }
  0x85   : > { %1400 = vperm.xlu1 %1886, %v2394_v2   ;;  %1356 = vperm.xlu2 %1883, %v2436_v54  }
  0x88   : > { %1833 = vmatmul.msk.f32.gmra.mxu0 %vm478_vm0, %v2289_v50  ;;  %v2462_v50 = vld [vmem:[%s2388_s24 + $0x28] sm:$0xff] }
  0x8b   : > { %1802 = vmatmul.msk.f32.gmra.mxu2 %vm478_vm0, %v2228_v10 }
  0x8c   : > { %1818 = vmatmul.msk.f32.gmra.mxu3 %vm478_vm0, %v2225_v9 }
  0x8d   : > { %1408 = vperm.xlu1 %1886, %v2436_v54   ;;  %1361 = vperm.xlu2 %1883, %v2462_v50  }
  0x90   : > { %1834 = vmatmul.msk.f32.gmra.mxu0 %vm478_vm0, %v2312_v3  ;;  %v2465_v3 = vld [vmem:[%s2388_s24] sm:$0xff] }
  0x91   : > { %1336 = vperm.xlu0 %1881, %v2465_v3  }
  0x93   : > { %1803 = vmatmul.msk.f32.gmra.mxu2 %vm478_vm0, %v2039_v17 }
  0x94   : > { %1819 = vmatmul.msk.f32.gmra.mxu3 %vm478_vm0, %v2036_v16 }
  0x95   : > { %1420 = vperm.xlu1 %1886, %v2418_v39   ;;  %1884 = vset.pattern.permute.xlu2 %v1908_v38 }
  0x96   : > { %1392 = vperm.xlu2 %1884, %v2465_v3  }
  0x98   : > { %1835 = vmatmul.msk.f32.gmra.mxu0 %vm478_vm0, %v2335_v20 }
  0x9b   : > { %1804 = vmatmul.msk.f32.gmra.mxu2 %vm478_vm0, %v2086_v31  ;;  %v2444_v17 = vpop.f32.mrf.mxu0 }
  0x9c   : > { %1820 = vmatmul.msk.f32.gmra.mxu3 %vm478_vm0, %v2074_v28  ;;  %v585_v36 = vpop.f32.mrf.mxu1 }
  0x9e   : > { %v532_v16 = vpop.f32.mrf.mxu2  ;;  %1404 = vperm.xlu2 %1884, %v2408_v7  }
  0x9f   : > { %v597_v55 = vpop.f32.mrf.mxu3 }
  0xa0   : > { %v2446_v9 = vadd.f32 %v597_v55, %v532_v16  ;;  %1836 = vmatmul.msk.f32.gmra.mxu0 %vm478_vm0, %v2352_v34  ;;  %v1910_v34 = vmov 3   ;;  %v586_v16 = vadd.f32 %v585_v36, %v2444_v17 }
  0xa3   : > { %1805 = vmatmul.msk.f32.gmra.mxu2 %vm478_vm0, %v2142_v47 }
  0xa4   : > { %1821 = vmatmul.msk.f32.gmra.mxu3 %vm478_vm0, %v2139_v46  ;;  %v2455_v31 = vpop.f32.mrf.mxu0  ;;  %v1909_v46 = vmov 2  }
  0xa5   : > { %1889 = vset.pattern.permute.xlu1 %v1909_v46 }
  0xa6   : > { %v535_v28 = vpop.f32.mrf.mxu2  ;;  %1449 = vperm.xlu1 %1889, %v2394_v2   ;;  %1412 = vperm.xlu2 %1884, %v2462_v50  }
  0xa7   : > { %v600_v10 = vpop.f32.mrf.mxu3 }
  0xa8   : > { %v2457_v33 = vadd.f32 %v600_v10, %v535_v28  ;;  %1837 = vmatmul.msk.f32.gmra.mxu0 %vm478_vm0, %v2366_v48  ;;  %v588_v48 = vpop.f32.mrf.mxu1 }
  0xa9   : > { %v589_v11 = vadd.f32 %v588_v48, %v2455_v31  ;;  %v2591_v31 = vld [vmem:[%s2802_s3] ss:$0 sm:$0xff] }
  0xab   : > { %1806 = vmatmul.msk.f32.gmra.mxu2 %vm478_vm0, %v2198_v63  ;;  %v2486_v63 = vld [vmem:[%s2388_s24 + $0x8] sm:$0xff] }
  0xac   : > { %1822 = vmatmul.msk.f32.gmra.mxu3 %vm478_vm0, %v2195_v62  ;;  %v2474_v47 = vpop.f32.mrf.mxu0  ;;  %v1679_v62 = vld [vmem:[%s2027_s14 + $0x110] sm:$0xff]  ;;  %1341 = vperm.xlu0 %1881, %v2486_v63  }
  0xae   : > { %v538_v12 = vpop.f32.mrf.mxu2  ;;  %1457 = vperm.xlu1 %1889, %v2436_v54   ;;  %1887 = vset.pattern.permute.xlu2 %v1909_v46 }
  0xaf   : > { %v603_v13 = vpop.f32.mrf.mxu3  ;;  %1441 = vperm.xlu2 %1887, %v2465_v3  }
  0xb0   : > { %v2480_v14 = vadd.f32 %v603_v13, %v538_v12  ;;  %1838 = vmatmul.msk.f32.gmra.mxu0 %vm478_vm0, %v2381_v61  ;;  %v591_v56 = vpop.f32.mrf.mxu1 }
  0xb3   : > { %1807 = vmatmul.msk.f32.gmra.mxu2 %vm478_vm0, %v423_v15 }
  0xb4   : > { %1823 = vmatmul.msk.f32.gmra.mxu3 %vm478_vm0, %v1679_v62  ;;  %1366 = vperm.xlu0 %1881, %v1331_v26  }
  0xb5   : > { %v2495_v20 = vpop.f32.mrf.mxu0 }
  0xb6   : > { %v541_v23 = vpop.f32.mrf.mxu2  ;;  %1469 = vperm.xlu1 %1889, %v2418_v39  }
  0xb7   : > { %v606_v24 = vpop.f32.mrf.mxu3  ;;  %1453 = vperm.xlu2 %1887, %v2408_v7  }
  0xb8   : > { %v2501_v25 = vadd.f32 %v606_v24, %v541_v23  ;;  %1839 = vmatmul.msk.f32.gmra.mxu0 %vm478_vm0, %v1111_v21  ;;  %v594_v61 = vpop.f32.mrf.mxu1  ;;  %v592_v21 = vadd.f32 %v591_v56, %v2474_v47 }
  0xbc   : > { %1885 = vset.pattern.permute.xlu0 %v1908_v38 }
  0xbd   : > { %v2507_v27 = vpop.f32.mrf.mxu0  ;;  %1396 = vperm.xlu0 %1885, %v2486_v63  }
  0xbe   : > { %v684_v30 = vpop.f32.mrf.mxu2  ;;  %1892 = vset.pattern.permute.xlu1 %v1910_v34 }
  0xbf   : > { %v766_v32 = vpop.f32.mrf.mxu3  ;;  %1498 = vperm.xlu1 %1892, %v2394_v2   ;;  %1461 = vperm.xlu2 %1887, %v2462_v50   ;;  %v708_v55 = vadd.f32 %v684_v30, %v586_v16  ;;  %v2596_v30 = vld [vmem:[%s2803_s4] ss:$0 sm:$0xff] }
  0xc0   : > { %v954_v4 = vpop.f32.mrf.mxu1 }
  0xc1   : > { %v790_v10 = vadd.f32 %v766_v32, %v708_v55 }
  0xc3   : > { %v872_v12 = vadd.f32 %v2507_v27, %v790_v10 }
  0xc5   : > { %v2516_v35 = vpop.f32.mrf.mxu0  ;;  %1416 = vperm.xlu0 %1885, %v1331_v26   ;;  %v978_v17 = vadd.f32 %v954_v4, %v872_v12 }
  0xc6   : > { %v687_v40 = vpop.f32.mrf.mxu2 }
  0xc7   : > { %v769_v41 = vpop.f32.mrf.mxu3  ;;  %1506 = vperm.xlu1 %1892, %v2436_v54   ;;  %1890 = vset.pattern.permute.xlu2 %v1910_v34  ;;  %v709_v13 = vadd.f32 %v687_v40, %v589_v11  ;;  %v595_v40 = vadd.f32 %v594_v61, %v2495_v20 }
  0xc8   : > { %1490 = vperm.xlu2 %1890, %v2465_v3   ;;  %v957_v3 = vpop.f32.mrf.mxu1 }
  0xcd   : > { %v2523_v42 = vpop.f32.mrf.mxu0  ;;  %1888 = vset.pattern.permute.xlu0 %v1909_v46 }
  0xce   : > { %v690_v44 = vpop.f32.mrf.mxu2  ;;  %1445 = vperm.xlu0 %1888, %v2486_v63  }
  0xcf   : > { %v2528_v45 = vpop.f32.mrf.mxu3  ;;  %1518 = vperm.xlu1 %1892, %v2418_v39   ;;  %v2566_v39 = vpop.permute.xlu1 %1346 }
  0xd0   : > { %1502 = vperm.xlu2 %1890, %v2408_v7   ;;  %v960_v22 = vpop.f32.mrf.mxu1 }
  0xd5   : > { %v2533_v49 = vpop.f32.mrf.mxu0 }
  0xd6   : > { %v2538_v52 = vpop.f32.mrf.mxu2  ;;  %1465 = vperm.xlu0 %1888, %v1331_v26  }
  0xd7   : > { %v2540_v53 = vpop.f32.mrf.mxu3  ;;  %v2576_v7 = vpop.permute.xlu1 %1351  ;;  %v711_v51 = vadd.f32 %v2538_v52, %v595_v40 }
  0xd8   : > { %1510 = vperm.xlu2 %1890, %v2462_v50   ;;  %v963_v58 = vpop.f32.mrf.mxu1 }
  0xd9   : > { %v793_v55 = vadd.f32 %v2540_v53, %v711_v51 }
  0xdd   : > { %v2543_v57 = vpop.f32.mrf.mxu0 }
  0xde   : > { %v2548_v59 = vpop.f32.mrf.mxu2  ;;  %1891 = vset.pattern.permute.xlu0 %v1910_v34 }
  0xdf   : > { %v2550_v60 = vpop.f32.mrf.mxu3  ;;  %1494 = vperm.xlu0 %1891, %v2486_v63   ;;  %v791_v63 = vadd.f32 %v769_v41, %v709_v13  ;;  %v2584_v18 = vpop.permute.xlu2 %1356 }
  0xe1   : > { %v873_v24 = vadd.f32 %v2516_v35, %v791_v63 }
  0xe3   : > { %v979_v34 = vadd.f32 %v957_v3, %v873_v24 }
  0xe5   : > { %v2554_v0 = vpop.f32.mrf.mxu0 }
  0xe6   : > { %v2556_v1 = vpop.f32.mrf.mxu2 }
  0xe7   : > { %v2558_v2 = vpop.f32.mrf.mxu3  ;;  %1514 = vperm.xlu0 %1891, %v1331_v26   ;;  %v710_v26 = vadd.f32 %v690_v44, %v592_v21  ;;  %v1362_v35 = vpop.permute.xlu2 %1361 }
  0xe8   : > { %v966_v21 = vpop.f32.mrf.mxu1 }
  0xe9   : > { %v792_v47 = vadd.f32 %v2528_v45, %v710_v26 }
  0xeb   : > { %v874_v56 = vadd.f32 %v2523_v42, %v792_v47  ;;  %v2616_v42 = vld [vmem:[%s2807_s8] sm:$0xf] }
  0xec   : > { %v2623_v63 = vperm.slane %v2616_v42, 0  ;;  %v2626_v24 = vperm.slane %v2616_v42, 1 }
  0xed   : > { %v2564_v6 = vpop.f32.mrf.mxu0  ;;  %v980_v3 = vadd.f32 %v960_v22, %v874_v56 }
  0xee   : > { %v2568_v38 = vpop.f32.mrf.mxu2  ;;  %v1372_v50 = vpop.permute.xlu1 %1371 }
  0xef   : > { %v2570_v54 = vpop.f32.mrf.mxu3 }
  0xf0   : > { %v2611_v11 = vpop.permute.xlu2 %1392 }
  0xf5   : > { %v2574_v28 = vpop.f32.mrf.mxu0 }
  0xf6   : > { %v2578_v46 = vpop.f32.mrf.mxu2 }
  0xf7   : > { %v2580_v8 = vpop.f32.mrf.mxu3  ;;  %v2600_v37 = vpop.permute.xlu1 %1400 }
  0xfd   : > { %v1140_v15 = vpop.f32.mrf.mxu0 }
  0xfe   : > { %v1015_v62 = vpop.f32.mrf.mxu2 }
  0xff   : > { %v1076_v19 = vpop.f32.mrf.mxu3  ;;  %v1039_v23 = vadd.f32 %v1015_v62, %v978_v17  ;;  %v2609_v61 = vpop.permute.xlu1 %1408  ;;  %v712_v17 = vadd.f32 %v2548_v59, %v2446_v9  ;;  %v1382_v9 = vmul.f32 %v2623_v63, %v1372_v50 }
 0x101   : > { %v1100_v29 = vadd.f32 %v1076_v19, %v1039_v23 }
 0x103   : > { %v1164_v27 = vadd.f32 %v1140_v15, %v1100_v29  ;;  %v875_v15 = vadd.f32 %v2533_v49, %v793_v55  ;;  %v1380_v55 = vmul.f32 %v2623_v63, %v1362_v35 }
 0x105   : > { %v1143_v32 = vpop.f32.mrf.mxu0  ;;  %v1176_v36 = vmul.f32 %v2591_v31, %v1164_v27  ;;  %v981_v29 = vadd.f32 %v963_v58, %v875_v15  ;;  %v794_v27 = vadd.f32 %v2550_v60, %v712_v17 }
 0x106   : > { %v1018_v41 = vpop.f32.mrf.mxu2 }
 0x107   : > { %v1079_v43 = vpop.f32.mrf.mxu3  ;;  %v1188_v44 = vadd.f32 %v2596_v30, %v1176_v36  ;;  %v1040_v48 = vadd.f32 %v1018_v41, %v979_v34  ;;  %v1421_v59 = vpop.permute.xlu1 %1420  ;;  %v876_v60 = vadd.f32 %v2543_v57, %v794_v27 }
 0x108   : > { %v1431_v41 = vmul.f32 %v2626_v24, %v1421_v59 }
 0x109   : > { %v1196_v4 = vmul.f32 0.01, %v1188_v44  ;;  %v1101_v5 = vadd.f32 %v1079_v43, %v1040_v48  ;;  %v713_v43 = vadd.f32 %v2556_v1, %v2457_v33 }
 0x10a   : > { %v2639_v51 = vadd.f32 %v1431_v41, %v1382_v9 }
 0x10b   : > { %v1204_v45 = vmax.f32 %v1188_v44, %v1196_v4  ;;  %v1165_v16 = vadd.f32 %v1143_v32, %v1101_v5  ;;  %v2632_v32 = vpop.permute.xlu2 %1404  ;;  %v795_v58 = vadd.f32 %v2558_v2, %v713_v43  ;;  %v982_v5 = vadd.f32 %v966_v21, %v876_v60 }
 0x10c   : > { %v714_v2 = vadd.f32 %v2568_v38, %v2480_v14 }
 0x10d   : > { %v1146_v10 = vpop.f32.mrf.mxu0  ;;  %v1177_v20 = vmul.f32 %v2591_v31, %v1165_v16  ;;  %1840 = vmatmul.msk.f32.vlgmr.msra.gmra.mxu1 %vm478_vm0, %v1204_v45  ;;  %v969_v45 = vpop.f32.mrf.mxu1 }
 0x10e   : > { %v1021_v52 = vpop.f32.mrf.mxu2 }
 0x10f   : > { %v1082_v12 = vpop.f32.mrf.mxu3  ;;  %v1189_v13 = vadd.f32 %v2596_v30, %v1177_v20  ;;  %v1041_v53 = vadd.f32 %v1021_v52, %v980_v3  ;;  %v877_v52 = vadd.f32 %v2554_v0, %v795_v58 }
 0x111   : > { %v1102_v62 = vadd.f32 %v1082_v12, %v1041_v53  ;;  %v1197_v19 = vmul.f32 0.01, %v1189_v13 }
 0x113   : > { %v1166_v22 = vadd.f32 %v1146_v10, %v1102_v62  ;;  %v1205_v23 = vmax.f32 %v1189_v13, %v1197_v19  ;;  %v1413_v33 = vpop.permute.xlu2 %1412  ;;  %v983_v62 = vadd.f32 %v969_v45, %v877_v52  ;;  %v796_v19 = vadd.f32 %v2570_v54, %v714_v2 }
 0x114   : > { %v1429_v20 = vmul.f32 %v2626_v24, %v1413_v33 }
 0x115   : > { %v1149_v26 = vpop.f32.mrf.mxu0  ;;  %v1178_v49 = vmul.f32 %v2591_v31, %v1166_v22  ;;  %1841 = vmatmul.msk.f32.gmra.mxu1 %vm478_vm0, %v1205_v23  ;;  %v972_v14 = vpop.f32.mrf.mxu1  ;;  %v878_v38 = vadd.f32 %v2564_v6, %v796_v19 }
 0x116   : > { %v1024_v34 = vpop.f32.mrf.mxu2  ;;  %v2650_v53 = vadd.f32 %v1429_v20, %v1380_v55 }
 0x117   : > { %v1085_v47 = vpop.f32.mrf.mxu3  ;;  %v1190_v36 = vadd.f32 %v2596_v30, %v1178_v49  ;;  %v1042_v40 = vadd.f32 %v1024_v34, %v981_v29  ;;  %v715_v29 = vadd.f32 %v2578_v46, %v2501_v25  ;;  %v984_v54 = vadd.f32 %v972_v14, %v878_v38 }
 0x118   : > { %v2687_v38 = vperm.slane %v2616_v42, 3 }
 0x119   : > { %v1103_v44 = vadd.f32 %v1085_v47, %v1042_v40  ;;  %v1198_v48 = vmul.f32 0.01, %v1190_v36  ;;  %v797_v34 = vadd.f32 %v2580_v8, %v715_v29 }
 0x11b   : > { %v1167_v50 = vadd.f32 %v1149_v26, %v1103_v44  ;;  %v1206_v56 = vmax.f32 %v1190_v36, %v1198_v48  ;;  %v879_v60 = vadd.f32 %v2574_v28, %v797_v34 }
 0x11d   : > { %v1152_v4 = vpop.f32.mrf.mxu0  ;;  %v1179_v16 = vmul.f32 %v2591_v31, %v1167_v50  ;;  %1842 = vmatmul.msk.f32.gmra.mxu1 %vm478_vm0, %v1206_v56  ;;  %v975_v44 = vpop.f32.mrf.mxu1 }
 0x11e   : > { %v1027_v1 = vpop.f32.mrf.mxu2  ;;  %v985_v56 = vadd.f32 %v975_v44, %v879_v60 }
 0x11f   : > { %v1088_v57 = vpop.f32.mrf.mxu3  ;;  %v1191_v10 = vadd.f32 %v2596_v30, %v1179_v16  ;;  %v1043_v3 = vadd.f32 %v1027_v1, %v982_v5 }
 0x121   : > { %v1104_v12 = vadd.f32 %v1088_v57, %v1043_v3  ;;  %v1199_v13 = vmul.f32 0.01, %v1191_v10 }
 0x123   : > { %v1168_v15 = vadd.f32 %v1152_v4, %v1104_v12  ;;  %v1207_v17 = vmax.f32 %v1191_v10, %v1199_v13  ;;  %v1337_v10 = vpop.permute.xlu0 %1336 }
 0x125   : > { %v1155_v35 = vpop.f32.mrf.mxu0  ;;  %v1180_v21 = vmul.f32 %v2591_v31, %v1168_v15  ;;  %1843 = vmatmul.msk.f32.gmra.mxu1 %vm478_vm0, %v1207_v17  ;;  %v1442_v15 = vpop.permute.xlu2 %1441 }
 0x126   : > { %v1030_v22 = vpop.f32.mrf.mxu2 }
 0x127   : > { %v1091_v23 = vpop.f32.mrf.mxu3  ;;  %v1192_v0 = vadd.f32 %v2596_v30, %v1180_v21  ;;  %v1044_v26 = vadd.f32 %v1030_v22, %v983_v62  ;;  %v1450_v62 = vpop.permute.xlu1 %1449  ;;  %v1424_v21 = vmul.f32 %v2626_v24, %v2611_v11  ;;  %v2681_v22 = vperm.slane %v2616_v42, 2 }
 0x128   : > { %v1377_v42 = vmul.f32 %v2623_v63, %v2566_v39 }
 0x129   : > { %v1105_v27 = vadd.f32 %v1091_v23, %v1044_v26  ;;  %v1200_v49 = vmul.f32 0.01, %v1192_v0  ;;  %v1473_v26 = vmul.f32 %v2681_v22, %v1442_v15  ;;  %v1475_v44 = vmul.f32 %v2681_v22, %v1450_v62 }
 0x12a   : > { %v1428_v62 = vmul.f32 %v2626_v24, %v2609_v61 }
 0x12b   : > { %v1169_v9 = vadd.f32 %v1155_v35, %v1105_v27  ;;  %v1208_v59 = vmax.f32 %v1192_v0, %v1200_v49  ;;  %v1342_v2 = vpop.permute.xlu0 %1341 }
 0x12c   : > { %v1376_v49 = vmul.f32 %v2623_v63, %v1342_v2 }
 0x12d   : > { %v1181_v47 = vmul.f32 %v2591_v31, %v1169_v9  ;;  %1844 = vmatmul.msk.f32.gmra.mxu1 %vm478_vm0, %v1208_v59  ;;  %v1158_v36 = vpop.f32.mrf.mxu0  ;;  %v1454_v35 = vpop.permute.xlu2 %1453 }
 0x12e   : > { %v1033_v40 = vpop.f32.mrf.mxu2 }
 0x12f   : > { %v1094_v41 = vpop.f32.mrf.mxu3  ;;  %v1193_v43 = vadd.f32 %v2596_v30, %v1181_v47  ;;  %v1045_v6 = vadd.f32 %v1033_v40, %v984_v54  ;;  %v1458_v23 = vpop.permute.xlu1 %1457  ;;  %v1426_v40 = vmul.f32 %v2626_v24, %v2600_v37 }
 0x131   : > { %v1106_v25 = vadd.f32 %v1094_v41, %v1045_v6  ;;  %v1201_v46 = vmul.f32 0.01, %v1193_v43  ;;  %v1434_v39 = vadd.f32 %v1426_v40, %v1377_v42 }
 0x133   : > { %v1170_v48 = vadd.f32 %v1158_v36, %v1106_v25  ;;  %v1209_v50 = vmax.f32 %v1193_v43, %v1201_v46  ;;  %v2671_v12 = vpop.permute.xlu0 %1366  ;;  %v2698_v36 = vld [vmem:[%s2808_s9] ss:$0 sm:$0xff] }
 0x134   : > { %v2709_v25 = vld [vmem:[%s2809_s10] ss:$0 sm:$0xff] }
 0x135   : > { %v1182_v8 = vmul.f32 %v2591_v31, %v1170_v48  ;;  %1845 = vmatmul.msk.f32.gmra.mxu1 %vm478_vm0, %v1209_v50  ;;  %v1161_v16 = vpop.f32.mrf.mxu0  ;;  %v2714_v46 = vld [vmem:[%s2805_s6] ss:$0 sm:$0xff] }
 0x136   : > { %v1036_v58 = vpop.f32.mrf.mxu2  ;;  %v2721_v50 = vld [vmem:[%s2806_s7] ss:$0 sm:$0xff] }
 0x137   : > { %v1097_v4 = vpop.f32.mrf.mxu3  ;;  %v1194_v5 = vadd.f32 %v2596_v30, %v1182_v8  ;;  %v1046_v45 = vadd.f32 %v1036_v58, %v985_v56  ;;  %v2693_v47 = vpop.permute.xlu1 %1469  ;;  %v1378_v58 = vmul.f32 %v2623_v63, %v2576_v7 }
 0x139   : > { %v1107_v55 = vadd.f32 %v1097_v4, %v1046_v45  ;;  %v1202_v33 = vmul.f32 0.01, %v1194_v5  ;;  %v1427_v4 = vmul.f32 %v2626_v24, %v2632_v32 }
 0x13b   : > { %v1171_v1 = vadd.f32 %v1161_v16, %v1107_v55  ;;  %v1210_v28 = vmax.f32 %v1194_v5, %v1202_v33  ;;  %v1397_v13 = vpop.permute.xlu0 %1396  ;;  %v1483_v5 = vadd.f32 %v1475_v44, %v1434_v39 }
 0x13c   : > { %v1425_v11 = vmul.f32 %v2626_v24, %v1397_v13 }
 0x13d   : > { %v1183_v57 = vmul.f32 %v2591_v31, %v1171_v1  ;;  %1846 = vmatmul.msk.f32.gmra.mxu1 %vm478_vm0, %v1210_v28  ;;  %v2675_v31 = vpop.permute.xlu2 %1461 }
 0x13e   : > { %v1433_v59 = vadd.f32 %v1425_v11, %v1376_v49  ;;  %v1477_v49 = vmul.f32 %v2681_v22, %v1458_v23  ;;  %v1478_v44 = vmul.f32 %v2681_v22, %v2675_v31 }
 0x13f   : > { %v1195_v3 = vadd.f32 %v2596_v30, %v1183_v57  ;;  %v1375_v30 = vmul.f32 %v2623_v63, %v1337_v10  ;;  %v1499_v45 = vpop.permute.xlu1 %1498  ;;  %v1435_v57 = vadd.f32 %v1427_v4, %v1378_v58  ;;  %v1476_v10 = vmul.f32 %v2681_v22, %v1454_v35 }
 0x140   : > { %v1524_v16 = vmul.f32 %v2687_v38, %v1499_v45  ;;  %v1379_v35 = vmul.f32 %v2623_v63, %v2584_v18  ;;  %v1381_v45 = vmul.f32 %v2623_v63, %v2671_v12 }
 0x141   : > { %v1203_v20 = vmul.f32 0.01, %v1195_v3  ;;  %v1432_v0 = vadd.f32 %v1424_v21, %v1375_v30 }
 0x143   : > { %v1211_v52 = vmax.f32 %v1195_v3, %v1203_v20  ;;  %v2673_v17 = vpop.permute.xlu0 %1416  ;;  %v1481_v27 = vadd.f32 %v1473_v26, %v1432_v0  ;;  %v1532_v3 = vadd.f32 %v1524_v16, %v1483_v5 }
 0x145   : > { %1847 = vmatmul.msk.f32.gmra.mxu1 %vm478_vm0, %v1211_v52  ;;  %v1491_v29 = vpop.permute.xlu2 %1490  ;;  %v1544_v21 = vmul.f32 %v2698_v36, %v1532_v3 }
 0x146   : > { %v1522_v9 = vmul.f32 %v2687_v38, %v1491_v29 }
 0x147   : > { %v1556_v11 = vadd.f32 %v2709_v25, %v1544_v21 }
 0x148   : > { %v1530_v54 = vadd.f32 %v1522_v9, %v1481_v27  ;;  %v1436_v27 = vadd.f32 %v1428_v62, %v1379_v35 }
 0x14a   : > { %v1542_v43 = vmul.f32 %v2698_v36, %v1530_v54  ;;  %v1507_v54 = vpop.permute.xlu1 %1506  ;;  %v1485_v40 = vadd.f32 %v1477_v49, %v1436_v27 }
 0x14b   : > { %v1446_v19 = vpop.permute.xlu0 %1445 }
 0x14c   : > { %v1474_v34 = vmul.f32 %v2681_v22, %v1446_v19  ;;  %v1554_v37 = vadd.f32 %v2709_v25, %v1542_v43  ;;  %v1484_v19 = vadd.f32 %v1476_v10, %v1435_v57  ;;  %v1564_v43 = vmul.f32 0.01, %v1556_v11 }
 0x14d   : > { %v1503_v32 = vpop.permute.xlu2 %1502 }
 0x14e   : > { %v1482_v6 = vadd.f32 %v1474_v34, %v1433_v59  ;;  %v1562_v55 = vmul.f32 0.01, %v1554_v37  ;;  %v1525_v30 = vmul.f32 %v2687_v38, %v1503_v32 }
 0x150   : > { %v1570_v52 = vmax.f32 %v1554_v37, %v1562_v55  ;;  %v1533_v18 = vadd.f32 %v1525_v30, %v1484_v19  ;;  %v1430_v55 = vmul.f32 %v2626_v24, %v2673_v17 }
 0x152   : > { %v1438_v3 = vadd.f32 %v1430_v55, %v1381_v45 }
 0x153   : > { %v2684_v14 = vpop.permute.xlu0 %1465 }
 0x154   : > { %v1479_v63 = vmul.f32 %v2681_v22, %v2684_v14  ;;  %v1480_v14 = vmul.f32 %v2681_v22, %v2693_v47 }
 0x15b   : > { %v1495_v41 = vpop.permute.xlu0 %1494 }
 0x15c   : > { %v1523_v60 = vmul.f32 %v2687_v38, %v1495_v41  ;;  %v1526_v41 = vmul.f32 %v2687_v38, %v1507_v54 }
 0x15e   : > { %v1531_v48 = vadd.f32 %v1523_v60, %v1482_v6  ;;  %v1545_v6 = vmul.f32 %v2698_v36, %v1533_v18  ;;  %v1534_v39 = vadd.f32 %v1526_v41, %v1485_v40 }
 0x160   : > { %v1543_v33 = vmul.f32 %v2698_v36, %v1531_v48  ;;  %v1557_v37 = vadd.f32 %v2709_v25, %v1545_v6  ;;  %v1546_v16 = vmul.f32 %v2698_v36, %v1534_v39 }
 0x162   : > { %v1555_v20 = vadd.f32 %v2709_v25, %v1543_v33  ;;  %v1486_v33 = vadd.f32 %v1478_v44, %v2650_v53  ;;  %v1565_v31 = vmul.f32 0.01, %v1557_v37  ;;  %v1558_v10 = vadd.f32 %v2709_v25, %v1546_v16 }
 0x163   : > { %v1515_v24 = vpop.permute.xlu0 %1514 }
 0x164   : > { %v1563_v0 = vmul.f32 0.01, %v1555_v20  ;;  %v1566_v32 = vmul.f32 0.01, %v1558_v10 }
 0x166   : > { %v1571_v59 = vmax.f32 %v1555_v20, %v1563_v0  ;;  %v1574_v0 = vmax.f32 %v1558_v10, %v1566_v32 }
 0x18a   : > { %v1261_v56 = vpop.f32.mrf.mxu1 }
 0x18b   : > { %v1289_v8 = vmul.f32 %v2714_v46, %v1261_v56  ;;  %v1572_v56 = vmax.f32 %v1556_v11, %v1564_v43  ;;  %v1488_v11 = vadd.f32 %v1480_v14, %v2639_v51 }
 0x18d   : > { %v1301_v1 = vadd.f32 %v2721_v50, %v1289_v8  ;;  %v1511_v8 = vpop.permute.xlu2 %1510 }
 0x18f   : > { %v1309_v28 = vmul.f32 0.01, %v1301_v1 }
 0x191   : > { %v1317_v7 = vmax.f32 %v1301_v1, %v1309_v28  ;;  %v1527_v1 = vmul.f32 %v2687_v38, %v1511_v8 }
 0x192   : > { %v1264_v2 = vpop.f32.mrf.mxu1 }
 0x193   : > { %v1578_v13 = vadd.f32 %v1570_v52, %v1317_v7  ;;  %v1290_v15 = vmul.f32 %v2714_v46, %v1264_v2  ;;  %v1535_v20 = vadd.f32 %v1527_v1, %v1486_v33  ;;  %v1573_v7 = vmax.f32 %v1557_v37, %v1565_v31 }
 0x195   : > { %1586 = vst [vmem:[%s2738_s25] sm:$0xff] %v1578_v13  ;;  %v1302_v26 = vadd.f32 %v2721_v50, %v1290_v15  ;;  %v1547_v2 = vmul.f32 %v2698_v36, %v1535_v20  ;;  %v1487_v13 = vadd.f32 %v1479_v63, %v1438_v3  ;;  %v1528_v15 = vmul.f32 %v2687_v38, %v1515_v24 }
 0x197   : > { %v1310_v29 = vmul.f32 0.01, %v1302_v26  ;;  %v1559_v19 = vadd.f32 %v2709_v25, %v1547_v2  ;;  %v1536_v21 = vadd.f32 %v1528_v15, %v1487_v13 }
 0x199   : > { %v1318_v9 = vmax.f32 %v1302_v26, %v1310_v29  ;;  %v1519_v26 = vpop.permute.xlu1 %1518 }
 0x19a   : > { %v1267_v61 = vpop.f32.mrf.mxu1  ;;  %v1529_v18 = vmul.f32 %v2687_v38, %v1519_v26 }
 0x19b   : > { %v1579_v34 = vadd.f32 %v1571_v59, %v1318_v9  ;;  %v1291_v42 = vmul.f32 %v2714_v46, %v1267_v61  ;;  %v1567_v9 = vmul.f32 0.01, %v1559_v19  ;;  %v1548_v59 = vmul.f32 %v2698_v36, %v1536_v21 }
 0x19c   : > { %v1537_v61 = vadd.f32 %v1529_v18, %v1488_v11 }
 0x19d   : > { %1587 = vst [vmem:[%s2738_s25 + $0x8] sm:$0xff] %v1579_v34  ;;  %v1303_v60 = vadd.f32 %v2721_v50, %v1291_v42  ;;  %v1560_v54 = vadd.f32 %v2709_v25, %v1548_v59  ;;  %v1575_v42 = vmax.f32 %v1559_v19, %v1567_v9 }
 0x19e   : > { %v1549_v43 = vmul.f32 %v2698_v36, %v1537_v61 }
 0x19f   : > { %v1311_v23 = vmul.f32 0.01, %v1303_v60  ;;  %v1568_v38 = vmul.f32 0.01, %v1560_v54 }
 0x1a1   : > { %v1319_v48 = vmax.f32 %v1303_v60, %v1311_v23  ;;  %v1561_v23 = vadd.f32 %v2709_v25, %v1549_v43  ;;  %v1576_v44 = vmax.f32 %v1560_v54, %v1568_v38 }
 0x1a2   : > { %v1270_v58 = vpop.f32.mrf.mxu1 }
 0x1a3   : > { %v1580_v4 = vadd.f32 %v1572_v56, %v1319_v48  ;;  %v1292_v5 = vmul.f32 %v2714_v46, %v1270_v58  ;;  %v1569_v8 = vmul.f32 0.01, %v1561_v23 }
 0x1a5   : > { %1588 = vst [vmem:[%s2738_s25 + $0x10] sm:$0xff] %v1580_v4  ;;  %v1304_v28 = vadd.f32 %v2721_v50, %v1292_v5  ;;  %v1577_v5 = vmax.f32 %v1561_v23, %v1569_v8 }
 0x1a7   : > { %v1312_v57 = vmul.f32 0.01, %v1304_v28 }
 0x1a9   : > { %v1320_v12 = vmax.f32 %v1304_v28, %v1312_v57 }
 0x1aa   : > { %v1273_v17 = vpop.f32.mrf.mxu1 }
 0x1ab   : > { %v1581_v53 = vadd.f32 %v1573_v7, %v1320_v12  ;;  %v1293_v52 = vmul.f32 %v2714_v46, %v1273_v17 }
 0x1ad   : > { %1589 = vst [vmem:[%s2738_s25 + $0x18] sm:$0xff] %v1581_v53  ;;  %v1305_v35 = vadd.f32 %v2721_v50, %v1293_v52 }
 0x1af   : > { %v1313_v62 = vmul.f32 0.01, %v1305_v35 }
 0x1b1   : > { %v1321_v30 = vmax.f32 %v1305_v35, %v1313_v62 }
 0x1b2   : > { %v1276_v29 = vpop.f32.mrf.mxu1 }
 0x1b3   : > { %v1582_v27 = vadd.f32 %v1574_v0, %v1321_v30  ;;  %v1294_v49 = vmul.f32 %v2714_v46, %v1276_v29 }
 0x1b5   : > { %1590 = vst [vmem:[%s2738_s25 + $0x20] sm:$0xff] %v1582_v27  ;;  %v1306_v22 = vadd.f32 %v2721_v50, %v1294_v49 }
 0x1b7   : > { %v1314_v47 = vmul.f32 0.01, %v1306_v22 }
 0x1b9   : > { %v1322_v34 = vmax.f32 %v1306_v22, %v1314_v47 }
 0x1ba   : > { %v1279_v40 = vpop.f32.mrf.mxu1 }
 0x1bb   : > { %v1583_v41 = vadd.f32 %v1575_v42, %v1322_v34  ;;  %v1295_v51 = vmul.f32 %v2714_v46, %v1279_v40 }
 0x1bd   : > { %1591 = vst [vmem:[%s2738_s25 + $0x28] sm:$0xff] %v1583_v41  ;;  %v1307_v6 = vadd.f32 %v2721_v50, %v1295_v51 }
 0x1bf   : > { %v1315_v60 = vmul.f32 0.01, %v1307_v6 }
 0x1c1   : > { %v1323_v39 = vmax.f32 %v1307_v6, %v1315_v60 }
 0x1c2   : > { %v1282_v37 = vpop.f32.mrf.mxu1 }
 0x1c3   : > { %v1584_v48 = vadd.f32 %v1576_v44, %v1323_v39  ;;  %v1296_v56 = vmul.f32 %v2714_v46, %v1282_v37 }
 0x1c5   : > { %1592 = vst [vmem:[%s2738_s25 + $0x30] sm:$0xff] %v1584_v48  ;;  %v1308_v58 = vadd.f32 %v2721_v50, %v1296_v56 }
 0x1c7   : > { %v1316_v4 = vmul.f32 0.01, %v1308_v58 }
 0x1c9   : > { %v1324_v36 = vmax.f32 %v1308_v58, %v1316_v4 }
 0x1cb   : > { %v1585_v45 = vadd.f32 %v1577_v5, %v1324_v36 }
 0x1cd   : > { %1593 = vst [vmem:[%s2738_s25 + $0x38] sm:$0xff] %v1585_v45 }
 0x1ce PF: > { %s21_s17 = sadd.s32 1, %s1905_s17  }
 0x1cf   : > { %p18_p4 = scmp.ge.s32.totalorder %s21_s17, 4  }
 0x1d1   :  { %20 = sbr.rel (!%p18_p4) target bundleno = 1 (0x1), region = 108 }

</bundles_post_ra>
